<compile_context>
chip_gen: v7x
topology: tpu7x:2x2x1
jax: 0.10.0
libtpu: 0.0.40
codegen_flags: <defaults>
</compile_context>

<pallas_src>
import functools

import jax
import jax.numpy as jnp
from jax import lax
from jax.experimental import pallas as pl
from jax.experimental.pallas import tpu as pltpu


def cx_loss_kernel(t_ref, x_ref, o_ref, *, neg_inv_sigma, num_real_p,
                   q_tile, num_q_per_group):
    """Grid = (batch, q_group, q_tiles_per_group).

    t_ref : (1, C_pad, P_pad)   channel-normalized target (mxu dtype), resident
    x_ref : (1, C_pad, q_tile)  channel-normalized inference columns (mxu dtype)
    o_ref : (1, 1, P_pad, 128)  running per-row max of CX, lane-folded to 128
    """
    qi = pl.program_id(2)
    p_pad = o_ref.shape[2]

    # ---- per-(image, group) prologue: zero the running-max accumulator -----
    @pl.when(qi == 0)
    def _():
        o_ref[...] = jnp.zeros_like(o_ref)

    # cosine similarity: contract over channels (axis 0 of both) on the MXU.
    dist = lax.dot_general(
        t_ref[0], x_ref[0], (((0,), (0,)), ((), ())),
        preferred_element_type=jnp.float32)                        # (P_pad, q)

    # raw2 == 2 * raw_dist; the /2 folds exactly into the epsilon below.
    raw2 = jnp.maximum(1.0 - dist, 0.0)
    if num_real_p != p_pad:
        # padded target rows: never the min, and w -> exp(-inf) == 0.
        row_idx = lax.broadcasted_iota(jnp.int32, (p_pad, 1), 0)
        raw2 = jnp.where(row_idx < num_real_p, raw2, jnp.inf)

    div2 = jnp.min(raw2, axis=0, keepdims=True)                    # (1, q)
    # Exact reciprocal here: approx error would be amplified ~1/sigma in the
    # exponent (sigma = 0.1).  2e-5 == 2 * 1e-5 (the reference epsilon).
    col_scale = neg_inv_sigma / (div2 + 2e-5)                      # (1, q) < 0
    # b cancels exactly in w / w_sum; the exponent is <= 0 so exp is safe.
    w = jnp.exp(raw2 * col_scale)                                  # (P_pad, q)
    w_sum = jnp.sum(w, axis=0, keepdims=True)                      # (1, q)
    cx = w * pl.reciprocal(w_sum, approx=True)                     # (P_pad, q)

    if num_real_p != p_pad:
        # padded inference columns must not win the per-row max.
        col0 = (pl.program_id(1) * num_q_per_group + qi) * q_tile
        col_idx = col0 + lax.broadcasted_iota(jnp.int32, (1, q_tile), 1)
        cx = jnp.where(col_idx < num_real_p, cx, 0.0)

    # Lane-fold the q_tile columns down to the 128-wide accumulator slab and
    # fold into the resident output block (running max over spatial q).
    m = cx[:, 0:128]
    for s in range(1, q_tile // 128):
        m = jnp.maximum(m, cx[:, s * 128:(s + 1) * 128])
    o_ref[0, 0] = jnp.maximum(o_ref[0, 0], m)


def _choose_q_tile(p_cols, target):
    """Largest multiple of 128 that divides p_cols (itself a multiple of 128)
    and is <= target."""
    if p_cols <= target:
        return p_cols
    q = (target // 128) * 128
    while q > 128:
        if p_cols % q == 0:
            return q
        q -= 128
    return 128


def cx_loss(featureT, featureI, sigma=0.1, b=1.0, *, q_tile=None,
            num_groups=None, mxu_dtype=jnp.bfloat16, vmem_limit_bytes=None):
    """Pallas implementation of CXLoss.forward(featureT, featureI).

    Tuning notes:
      * v5e/v6e: q_tile=512 plus a raised vmem_limit_bytes (up to ~100 MiB)
        buys a few % for moderate P (128 MiB physical VMEM).
      * v7x: keep q_tile <= 256 (128 for very large P) -- 64 MiB VMEM.
      * mxu_dtype=jnp.float32 gives bit-accurate similarities at ~3-4x the
        MXU cost (f32 is decomposed into multiple bf16 passes).
    """
    del b  # cancels exactly in w / w_sum
    N, C, H, W = featureT.shape
    P = H * W
    eps = 1e-6

    # center_by_T + channel-wise L2 normalization (wrapper glue, exact f32).
    meanT = jnp.mean(featureT, axis=(0, 2, 3), keepdims=True)
    fT = featureT - meanT
    fI = featureI - meanT
    fT = fT / (jnp.linalg.norm(fT, axis=1, keepdims=True) + eps)
    fI = fI / (jnp.linalg.norm(fI, axis=1, keepdims=True) + eps)

    # Cast once to the MXU dtype; keep (N, C, P) layout (P on the lane axis,
    # no transpose, no extra HBM round trip).
    t_n = fT.reshape(N, C, P).astype(mxu_dtype)
    x_n = fI.reshape(N, C, P).astype(mxu_dtype)

    # Pad channels to a full sublane pack and P to a lane multiple.  Zero
    # channels contribute nothing to the contraction; padded patch rows and
    # columns are masked inside the kernel.
    c_mult = max(8, 32 // jnp.dtype(mxu_dtype).itemsize)
    C_pad = ((C + c_mult - 1) // c_mult) * c_mult
    P_pad = ((P + 127) // 128) * 128
    if (C_pad, P_pad) != (C, P):
        t_n = jnp.pad(t_n, ((0, 0), (0, C_pad - C), (0, P_pad - P)))
        x_n = jnp.pad(x_n, ((0, 0), (0, C_pad - C), (0, P_pad - P)))

    # Split the inference columns into parallel groups so a single-image call
    # still feeds both v7x TensorCores.
    num_lane_blocks = P_pad // 128
    if num_groups is None:
        num_groups = 2 if (N == 1 and num_lane_blocks % 2 == 0) else 1
    if num_lane_blocks % num_groups != 0:
        num_groups = 1
    p_group = P_pad // num_groups
    qt = _choose_q_tile(p_group, 256 if q_tile is None else q_tile)
    num_q = p_group // qt

    kernel = functools.partial(
        cx_loss_kernel, neg_inv_sigma=-1.0 / sigma, num_real_p=P,
        q_tile=qt, num_q_per_group=num_q)

    partial_max = pl.pallas_call(
        kernel,
        out_shape=jax.ShapeDtypeStruct((N, num_groups, P_pad, 128),
                                       jnp.float32),
        grid_spec=pltpu.PrefetchScalarGridSpec(
            num_scalar_prefetch=0,
            grid=(N, num_groups, num_q),
            in_specs=[
                # target: resident across the group / q axes
                pl.BlockSpec((1, C_pad, P_pad), lambda n, g, q: (n, 0, 0)),
                # inference: streamed in q-column tiles, offset by the group
                pl.BlockSpec((1, C_pad, qt),
                             lambda n, g, q: (n, 0, g * num_q + q)),
            ],
            out_specs=pl.BlockSpec((1, 1, P_pad, 128),
                                   lambda n, g, q: (n, g, 0, 0)),
        ),
        compiler_params=pltpu.CompilerParams(
            dimension_semantics=("parallel", "parallel", "arbitrary"),
            vmem_limit_bytes=vmem_limit_bytes),
    )(t_n, x_n)

    # Cheap epilogue in XLA: max over groups / folded lanes, mean over the
    # real P patches (padded rows are exactly 0), -log, mean over the batch.
    cx_max = jnp.max(partial_max, axis=(1, 3))           # (N, P_pad)
    mean_cx = jnp.sum(cx_max, axis=1) / P
    return jnp.mean(-jnp.log(mean_cx))
    # TODO(synk): the torch.isnan(...) -> pdb.set_trace() debugging hook has no
    # kernel equivalent; finiteness is asserted on the host side in the test.


def cx_loss_ref(featureT, featureI, sigma=0.1, b=1.0):
    """Pure-JAX reference mirroring the PyTorch module exactly."""
    meanT = jnp.mean(featureT, axis=(0, 2, 3), keepdims=True)
    fI = featureI - meanT
    fT = featureT - meanT
    eps = 1e-6
    fI = fI / (jnp.linalg.norm(fI, axis=1, keepdims=True) + eps)
    fT = fT / (jnp.linalg.norm(fT, axis=1, keepdims=True) + eps)
    N, C, H, W = fT.shape
    P = H * W
    T = fT.reshape(N, C, P)
    I = fI.reshape(N, C, P)
    dist = jnp.einsum('ncp,ncq->npq', T, I)        # (N, P_target, P_infer)
    raw = jnp.maximum((1.0 - dist) / 2.0, 0.0)
    rel = raw / (jnp.min(raw, axis=1, keepdims=True) + 1e-5)
    w = jnp.exp((b - rel) / sigma)
    cx = w / jnp.sum(w, axis=1, keepdims=True)
    cx = jnp.max(cx, axis=2)                       # max over spatial
    cx = jnp.mean(cx, axis=1)                      # mean over patches
    return jnp.mean(-jnp.log(cx))


if __name__ == "__main__":
    key = jax.random.PRNGKey(0)
    k1, k2 = jax.random.split(key)
    N, C, H, W = 2, 8, 16, 16
    featureT = jax.random.normal(k1, (N, C, H, W), dtype=jnp.float32)
    featureI = jax.random.normal(k2, (N, C, H, W), dtype=jnp.float32)

    ref = cx_loss_ref(featureT, featureI)

    # 1) Strict numerics gate: f32 MXU path.
    out_f32 = jax.block_until_ready(
        cx_loss(featureT, featureI, mxu_dtype=jnp.float32))
    assert jnp.isfinite(out_f32), out_f32
    assert jnp.allclose(out_f32, ref, rtol=5e-3, atol=5e-3), (out_f32, ref)

    # 2) Default path (bf16 MXU): sanity within bf16 rounding of the cosines.
    out_bf16 = jax.block_until_ready(cx_loss(featureT, featureI))
    assert jnp.isfinite(out_bf16), out_bf16
    assert jnp.allclose(out_bf16, ref, rtol=5e-2, atol=5e-2), (out_bf16, ref)

    # 3) N == 1 with P not a multiple of 128: exercises the row/column padding
    #    masks and the 2-way parallel q-group split (both v7x TensorCores).
    fT1 = featureT[:1, :, :14, :14]
    fI1 = featureI[:1, :, :14, :14]
    ref1 = cx_loss_ref(fT1, fI1)
    out1 = jax.block_until_ready(cx_loss(fT1, fI1, mxu_dtype=jnp.float32))
    assert jnp.isfinite(out1), out1
    assert jnp.allclose(out1, ref1, rtol=5e-3, atol=5e-3), (out1, ref1)

    print("KERNEL_OK")
</pallas_src>

<mosaic_0001>
module attributes {stable_mosaic.version = 11 : i64} {
  func.func @cx_loss_kernel(%arg0: i32, %arg1: i32, %arg2: i32, %arg3: memref<1x8x256xf32, #tpu.memory_space<vmem>>, %arg4: memref<1x8x256xf32, #tpu.memory_space<vmem>>, %arg5: memref<1x1x256x128xf32, #tpu.memory_space<vmem>>) attributes {dimension_semantics = [#tpu.dimension_semantics<parallel>, #tpu.dimension_semantics<parallel>, #tpu.dimension_semantics<arbitrary>], iteration_bounds = array<i64: 2, 1, 1>, scalar_prefetch = 0 : i64, scratch_operands = 0 : i64, tpu.core_type = #tpu.core_type<tc>, window_params = [{transform_indices = @transform_0, window_bounds = array<i64: 1, 8, 256>}, {transform_indices = @transform_1, window_bounds = array<i64: 1, 8, 256>}, {transform_indices = @transform_2, window_bounds = array<i64: 1, 1, 256, 128>}]} {
    %c0_i32 = arith.constant 0 : i32
    %0 = arith.cmpi eq, %arg2, %c0_i32 : i32
    %1 = arith.extui %0 : i1 to i32
    %c0_i32_0 = arith.constant 0 : i32
    %2 = arith.cmpi ne, %1, %c0_i32_0 : i32
    scf.if %2 {
      %cst_20 = arith.constant 0.000000e+00 : f32
      %35 = vector.broadcast %cst_20 : f32 to vector<1x1x256x128xf32>
      %c0_21 = arith.constant 0 : index
      %c0_22 = arith.constant 0 : index
      %c0_23 = arith.constant 0 : index
      %c0_24 = arith.constant 0 : index
      %36 = vector.load %arg5[%c0_21, %c0_22, %c0_23, %c0_24] : memref<1x1x256x128xf32, #tpu.memory_space<vmem>>, vector<1x1x256x128xf32>
      tpu.vector_store %arg5[%c0_21, %c0_22, %c0_23, %c0_24], %35 {strides = array<i32>} : memref<1x1x256x128xf32, #tpu.memory_space<vmem>>, vector<1x1x256x128xf32>,
    } else {
    }
    %c0 = arith.constant 0 : index
    %c0_1 = arith.constant 0 : index
    %c0_2 = arith.constant 0 : index
    %3 = vector.load %arg3[%c0, %c0_1, %c0_2] : memref<1x8x256xf32, #tpu.memory_space<vmem>>, vector<1x8x256xf32>
    %4 = vector.shape_cast %3 : vector<1x8x256xf32> to vector<8x256xf32>
    %c0_3 = arith.constant 0 : index
    %c0_4 = arith.constant 0 : index
    %c0_5 = arith.constant 0 : index
    %5 = vector.load %arg4[%c0_3, %c0_4, %c0_5] : memref<1x8x256xf32, #tpu.memory_space<vmem>>, vector<1x8x256xf32>
    %6 = vector.shape_cast %5 : vector<1x8x256xf32> to vector<8x256xf32>
    %cst = arith.constant dense<0.000000e+00> : vector<256x256xf32>
    %7 = tpu.matmul %4, %6, %cst {dimension_numbers = #tpu.dot_dimension_numbers<[0], [0], [1], [1], [0, 1, 1, 1], [], []>} : vector<8x256xf32>, vector<8x256xf32>, vector<256x256xf32> -> vector<256x256xf32>
    %cst_6 = arith.constant 1.000000e+00 : f32
    %8 = vector.broadcast %cst_6 : f32 to vector<256x256xf32>
    %9 = arith.subf %8, %7 : vector<256x256xf32>
    %cst_7 = arith.constant 0.000000e+00 : f32
    %10 = vector.broadcast %cst_7 : f32 to vector<256x256xf32>
    %11 = arith.maximumf %9, %10 : vector<256x256xf32>
    %cst_8 = arith.constant dense<0x7F800000> : vector<256xf32>
    %12 = vector.multi_reduction <minimumf>, %11, %cst_8 [0] : vector<256x256xf32> to vector<256xf32>
    %13 = vector.shape_cast %12 : vector<256xf32> to vector<1x256xf32>
    %cst_9 = arith.constant 2.000000e-05 : f32
    %14 = vector.broadcast %cst_9 : f32 to vector<1x256xf32>
    %15 = arith.addf %13, %14 : vector<1x256xf32>
    %cst_10 = arith.constant -1.000000e+01 : f32
    %16 = vector.broadcast %cst_10 : f32 to vector<1x256xf32>
    %17 = arith.divf %16, %15 : vector<1x256xf32>
    %18 = vector.broadcast %17 : vector<1x256xf32> to vector<256x256xf32>
    %19 = arith.mulf %11, %18 : vector<256x256xf32>
    %20 = math.exp %19 : vector<256x256xf32>
    %cst_11 = arith.constant dense<0.000000e+00> : vector<256xf32>
    %21 = vector.multi_reduction <add>, %20, %cst_11 [0] : vector<256x256xf32> to vector<256xf32>
    %22 = vector.shape_cast %21 : vector<256xf32> to vector<1x256xf32>
    %23 = tpu.reciprocal %22 {approx = true} : vector<1x256xf32> -> vector<1x256xf32>
    %24 = vector.broadcast %23 : vector<1x256xf32> to vector<256x256xf32>
    %25 = arith.mulf %20, %24 : vector<256x256xf32>
    %26 = vector.extract_strided_slice %25 {offsets = [0, 0], sizes = [256, 128], strides = [1, 1]} : vector<256x256xf32> to vector<256x128xf32>
    %27 = vector.extract_strided_slice %25 {offsets = [0, 128], sizes = [256, 128], strides = [1, 1]} : vector<256x256xf32> to vector<256x128xf32>
    %28 = arith.maximumf %26, %27 : vector<256x128xf32>
    %c0_12 = arith.constant 0 : index
    %c0_13 = arith.constant 0 : index
    %c0_14 = arith.constant 0 : index
    %c0_15 = arith.constant 0 : index
    %29 = vector.load %arg5[%c0_12, %c0_13, %c0_14, %c0_15] : memref<1x1x256x128xf32, #tpu.memory_space<vmem>>, vector<1x1x256x128xf32>
    %30 = vector.shape_cast %29 : vector<1x1x256x128xf32> to vector<256x128xf32>
    %31 = arith.maximumf %30, %28 : vector<256x128xf32>
    %c0_16 = arith.constant 0 : index
    %c0_17 = arith.constant 0 : index
    %c0_18 = arith.constant 0 : index
    %c0_19 = arith.constant 0 : index
    %32 = vector.load %arg5[%c0_16, %c0_17, %c0_18, %c0_19] : memref<1x1x256x128xf32, #tpu.memory_space<vmem>>, vector<1x1x256x128xf32>
    %33 = vector.shape_cast %32 : vector<1x1x256x128xf32> to vector<256x128xf32>
    %34 = vector.shape_cast %31 : vector<256x128xf32> to vector<1x1x256x128xf32>
    tpu.vector_store %arg5[%c0_16, %c0_17, %c0_18, %c0_19], %34 {strides = array<i32>} : memref<1x1x256x128xf32, #tpu.memory_space<vmem>>, vector<1x1x256x128xf32>,
    return
  }
  func.func @transform_0(%arg0: i32, %arg1: i32, %arg2: i32) -> (i32, i32, i32) {
    %c0_i32 = arith.constant 0 : i32
    %c0_i32_0 = arith.constant 0 : i32
    %c0_i32_1 = arith.constant 0 : i32
    return %arg0, %c0_i32, %c0_i32_0 : i32, i32, i32
  }
  func.func @transform_1(%arg0: i32, %arg1: i32, %arg2: i32) -> (i32, i32, i32) {
    %c1_i32 = arith.constant 1 : i32
    %0 = arith.muli %arg1, %c1_i32 : i32
    %1 = arith.addi %0, %arg2 : i32
    %c0_i32 = arith.constant 0 : i32
    %c0_i32_0 = arith.constant 0 : i32
    return %arg0, %c0_i32, %1 : i32, i32, i32
  }
  func.func @transform_2(%arg0: i32, %arg1: i32, %arg2: i32) -> (i32, i32, i32, i32) {
    %c0_i32 = arith.constant 0 : i32
    %c0_i32_0 = arith.constant 0 : i32
    %c0_i32_1 = arith.constant 0 : i32
    return %arg0, %arg1, %c0_i32, %c0_i32_0 : i32, i32, i32, i32
  }
}

</mosaic_0001>

<bundles_post_ra>
// kernel: tpu_custom_call.1
= control target key start
LH: loop header
LB: loop body
LE: loop exit
PB: predicated region body
PF: predicated region fallthrough
CT: control target
= control target key end

     0   :  { %7 = vsyncpa [#allocation3], 0  ;;  %s3101_s0 = inlined_call_operand.hbm [shape: f32[2,8,256], index: 0, kind: input, shape index: {}]   ;;  %s3102_s1 = inlined_call_operand.hbm [shape: f32[2,8,256], index: 1, kind: input, shape index: {}]   ;;  %s3103_s2 = inlined_call_operand.hbm [shape: f32[2,1,256,128], index: 2, kind: output, shape index: {}]  }
   0x1   :  { %9 = vsyncpa [#allocation3 + $0x1], 0 }
   0x2   :  { %10 = vsyncpa [#allocation6], 0 }
   0x3   :  { %12 = vsyncpa [#allocation6 + $0x1], 0 }
   0x4   :  { %13 = vsyncpa [#allocation4], 0 }
   0x5   :  { %15 = vsyncpa [#allocation4 + $0x1], 0  ;;  %s1915_s9 = smov 0   ;;  %s1917_s10 = smov 0  }
   0x6   :  { %s1919_s11 = smov 0   ;;  %s1921_s12 = smov 0  }
   0x7   :  { %s1923_s13 = smov 0   ;;  %s1925_s14 = smov 0  }
   0x8 LB: > { %s1484_s15 = sadd.s32 4294967295, %s1892_s14   ;;  %s1485_s16 = sadd.s32 4294967294, %s1892_s14   ;;  %s1892_s14 = sphi %s1925_s14, %s21_s14   ;;  %s1888_s13 = sphi %s1923_s13, %s3235_s13   ;;  %s1884_s12 = sphi %s1921_s12, %s3234_s12   ;;  %s1880_s11 = sphi %s1919_s11, %s3233_s11   ;;  %s1876_s10 = sphi %s1917_s10, %s3232_s10   ;;  %s1872_s9 = sphi %s1915_s9, %s3231_s9  }
   0x9   : > { %s40_s17 = sadd.s32 1, %s1888_s13  ;;  %s47_s18 = sadd.s32 1, %s1880_s11 }
   0xa   : > { %p42_p0 = scmp.ge.s32.totalorder %s40_s17, 2  ;;  %p54_p1 = scmp.ne.s32.totalorder %s1880_s11, %s1876_s10 }
   0xb   : > { %p55_p2 = scmp.eq.s32.totalorder %s1892_s14, 0  ;;  %p60_p3 = scmp.ne.s32.totalorder %s1876_s10, %s1872_s9 }
   0xc   : > { %s3237_s17 = smov (%p42_p0, %s40_s17), 0  ;;  %p61_p5 = scmp.eq.s32.totalorder %s1484_s15, 0 }
   0xd   : > { %p1956_p4 = por %p55_p2, %p54_p1  ;;  %s44_s20 = ssub.s32 %s1888_s13, %s3237_s17 }
   0xe   : > { %p116_p6 = scmp.eq.s32.totalorder %s1484_s15, 1  ;;  %p45_p7 = scmp.eq.s32.totalorder %s44_s20, 0 }
   0xf   : > { %p1962_p8 = por %p61_p5, %p60_p3  ;;  %p122_p10 = scmp.eq.s32.totalorder %s1485_s16, 1 }
  0x10   : > { %p1966_p9 = por %p116_p6, %p54_p1  ;;  %p1557_p13 = scmp.lt.s32.totalorder %s1892_s14, 2 }
  0x11   : > { %s3139_s21 = scalar_select %p1962_p8, 1, 0 }
  0x12   : > { %s3140_s22 = scalar_select %p1966_p9, 1, 0 }
  0x13   : > { %s1971_s23 = scalar_select %p45_p7, %s1880_s11, %s47_s18  }
  0x14   : > { %p1973_p11 = por %p122_p10, %p60_p3  ;;  %s1980_s25 = sand.u32 1, %s1880_s11  }
  0x15   : > { %s1488_s26 = sshll.u32 %s1980_s25, 4  ;;  %s1535_s27 = sshll.u32 %s1888_s13, 8 }
  0x16   : > { %s3141_s24 = scalar_select %p1973_p11, 1, 0 }
  0x17   : > { %s1989_s30 = scalar_lea.hbm %s3101_s0, %s1535_s27  ;;  %s146_s3 = scalar_lea.vmem [#allocation2], %s1488_s26 }
  0x18   : > { %s154_s4 = sshll.u32 %s146_s3, 4  ;;  %p1997_p0 = pnand %p1557_p13, %p1956_p4  ;;  %s1993_s4 = int_to_ptr.vmem [resolvable:$true] %s154_s4 }
  0x19   : > { %s143_s6 = scalar_lea.sflag [#allocation3], %s1980_s25  ;;  %s1746_s7 = scalar_lea.hbm %s1989_s30, 256 }
  0x1a   : > { %p1747_p3 = scmp.ne.s32.totalorder %s1989_s30, %s1746_s7  ;;  %p1748_p5 = pneg %p1997_p0 }
  0x1b   : > { %s1751_s16 = scalar_lea.hbm %s3101_s0, 512  ;;  %p1752_p4 = scmp.lt.u32.totalorder %s1989_s30, %s3101_s0 }
  0x1c   : > { %p1749_p6 = pnand %p1748_p5, %p1747_p3  ;;  %p1753_p10 = scmp.lt.u32.totalorder %s1751_s16, %s1746_s7 }
  0x1d   : > { %p1755_p12 = scmp.lt.u32.totalorder %s1746_s7, %s1989_s30 }
  0x1e   : > { %p1750_p7 = pneg %p1749_p6  ;;  %p1754_p13 = por %p1753_p10, %p1752_p4 }
  0x20   : > { %p1756_p1 = por %p1755_p12, %p1754_p13 }
  0x22   : > { %p1757_p2 = pnand %p1756_p1, %p1750_p7 }
  0x24   : > { %1760 = shalt.err (!%p1757_p2)
}
  0x25   : > { %s1761_s20 = scalar_lea.vmem %s1993_s4, 256  ;;  %s1894_s28 = smov [#allocation2]  }
  0x26   : > { %p1762_p3 = scmp.ne.s32.totalorder %s1993_s4, %s1761_s20  ;;  %s1766_s29 = sshll.u32 %s1894_s28, 4  ;;  %s1767_s29 = int_to_ptr.vmem [resolvable:$false] %s1766_s29 }
  0x27   : > { %s1768_s3 = scalar_lea.vmem %s1767_s29, 512  ;;  %p1769_p9 = scmp.lt.s32.totalorder %s1993_s4, %s1767_s29 }
  0x28   : > { %p1764_p6 = pnand %p1762_p3, %p1748_p5  ;;  %p1770_p4 = scmp.lt.s32.totalorder %s1768_s3, %s1761_s20 }
  0x2a   : > { %p1765_p11 = pneg %p1764_p6  ;;  %p1771_p10 = por %p1770_p4, %p1769_p9 }
  0x2c   : > { %p1772_p12 = pnand %p1771_p10, %p1765_p11 }
  0x2e   : > { %1775 = shalt.err (!%p1772_p12)
}
  0x2f   : > { %1549 = dma.hbm_to_vmem [thread:$0]  (!%p1997_p0), %s1989_s30, 256, %s1993_s4, %s143_s6  }
  0x30   : > { %p3143_p1 = scmp.lt.s32.totalorder %s1892_s14, 3  ;;  %p3144_p2 = scmp.ge.s32.totalorder %s1892_s14, 1 }
  0x31   : > { %s2042_s16 = scalar_lea.hbm %s3102_s1, %s1535_s27  ;;  %s165_s18 = scalar_lea.vmem [#allocation5], %s1488_s26 }
  0x32   : > { %p2033_p7 = pnand %p3144_p2, %p3143_p1  ;;  %s176_s19 = sshll.u32 %s165_s18, 4  ;;  %s177_s19 = int_to_ptr.vmem [resolvable:$true] %s176_s19 }
  0x33   : > { %s162_s30 = scalar_lea.sflag [#allocation6], %s1980_s25  ;;  %s1776_s4 = scalar_lea.hbm %s2042_s16, 256 }
  0x34   : > { %s3145_s7 = scalar_select %p2033_p7, 1, 0 }
  0x35   : > { %p1777_p9 = scmp.ne.s32.totalorder %s2042_s16, %s1776_s4  ;;  %s1781_s27 = scalar_lea.hbm %s3102_s1, 512 }
  0x36   : > { %p1782_p3 = scmp.lt.u32.totalorder %s2042_s16, %s3102_s1  ;;  %p1783_p6 = scmp.lt.u32.totalorder %s1781_s27, %s1776_s4 }
  0x37   : > { %p1779_p11 = pnand %p1777_p9, %p1748_p5  ;;  %p1785_p10 = scmp.lt.u32.totalorder %s1776_s4, %s2042_s16 }
  0x38   : > { %p1784_p4 = por %p1783_p6, %p1782_p3 }
  0x39   : > { %p1780_p13 = pneg %p1779_p11 }
  0x3a   : > { %p1786_p12 = por %p1785_p10, %p1784_p4 }
  0x3c   : > { %p1787_p1 = pnand %p1786_p12, %p1780_p13 }
  0x3e   : > { %1790 = shalt.err (!%p1787_p1)
}
  0x3f   : > { %s1791_s25 = scalar_lea.vmem %s177_s19, 256  ;;  %s1895_s26 = smov [#allocation5]  }
  0x40   : > { %p1792_p2 = scmp.ne.s32.totalorder %s177_s19, %s1791_s25  ;;  %s1796_s3 = sshll.u32 %s1895_s26, 4  ;;  %s1797_s3 = int_to_ptr.vmem [resolvable:$false] %s1796_s3 }
  0x41   : > { %s1798_s8 = scalar_lea.vmem %s1797_s3, 512  ;;  %p1799_p8 = scmp.lt.s32.totalorder %s177_s19, %s1797_s3 }
  0x42   : > { %p1794_p9 = pnand %p1792_p2, %p1748_p5  ;;  %p1800_p7 = scmp.lt.s32.totalorder %s1798_s8, %s1791_s25 }
  0x44   : > { %p1795_p11 = pneg %p1794_p9  ;;  %p1801_p3 = por %p1800_p7, %p1799_p8 }
  0x46   : > { %p1802_p6 = pnand %p1801_p3, %p1795_p11 }
  0x48   : > { %1805 = shalt.err (!%p1802_p6)
}
  0x49   : > { %1552 = dma.hbm_to_vmem [thread:$0]  (!%p1997_p0), %s2042_s16, 256, %s177_s19, %s162_s30  }
  0x4a   : > { %p3146_p13 = scmp.ne.s32.totalorder %s3145_s7, 0 }
  0x4c   : > { %185 = sbr.rel (%p3146_p13) target bundleno = 777 (0x309), region = 28 }
  0x53   : > { %s2069_s15 = sand.u32 1, %s1876_s10   ;;  %p3147_p5 = scmp.ne.s32.totalorder %s3139_s21, 0 }
  0x54   : > { %s1495_s18 = sshll.u32 %s2069_s15, 4  ;;  %s188_s4 = scalar_lea.sflag [#allocation3], %s2069_s15 }
  0x55   : > { %s191_s6 = scalar_lea.vmem [#allocation2], %s1495_s18 }
  0x56   : > { %1859 = dma.done.wait (%p3147_p5), %s188_s4, 256  }
  0x57   : > { %1861 = vsyncadd (%p3147_p5), %s188_s4, 4294967040  ;;  %s197_s5 = scalar_lea.sflag [#allocation6], %s2069_s15  ;;  %s200_s16 = scalar_lea.vmem [#allocation5], %s1495_s18 }
  0x58   : > { %1863 = dma.done.wait (%p3147_p5), %s197_s5, 256  }
  0x59   : > { %1865 = vsyncadd (%p3147_p5), %s197_s5, 4294967040  ;;  %v1896_v0 = vmov 0.0   ;;  %v264_v1 = vld [vmem:[%s191_s6] sm:$0xff]  ;;  %v267_v2 = vld [vmem:[%s200_s16 + $0x8] sm:$0xff]  ;;  %vm332_vm0 = vcmask 64512   ;;  %s1497_s21 = sshll.u32 %s2069_s15, 8 }
  0x5a   : > { %493 = vmatprep.mubr.f32.mxu0 %v1896_v0  ;;  %589 = vmatprep.mubr.f32.mxu1 %v1896_v0  ;;  %v266_v3 = vld [vmem:[%s200_s16] sm:$0xff]  ;;  %v265_v4 = vld [vmem:[%s191_s6 + $0x8] sm:$0xff]  ;;  %s2921_s7 = scalar_lea.vmem [#allocation7], %s1497_s21  ;;  %s1537_s19 = sshll.u32 %s1884_s12, 12 }
  0x5b   : > { %268 = vxpose.xlu0.b32.start.end [1/1] (short) %v264_v1, 128  ;;  %429 = vmatprep.subr.mxu0 %v267_v2  ;;  %s1370_s30 = sshll.u32 %s2921_s7, 4  ;;  %s3038_s27 = scalar_lea.hbm %s3103_s2, %s1537_s19  ;;  %s3040_s30 = int_to_ptr.vmem [resolvable:$true] %s1370_s30 }
  0x5c   : > { %430 = vmatpush1.msra.mxu0 %v266_v3  ;;  %1538 = vmatprep.subr.mxu1 %v267_v2  ;;  %s1355_s28 = scalar_lea.sflag [#allocation4], %s2069_s15  ;;  %s1806_s29 = scalar_lea.vmem %s3040_s30, 4096 }
  0x5d   : > { %1539 = vmatpush1.msra.mxu1 %v266_v3  ;;  %p1807_p8 = scmp.ne.s32.totalorder %s3040_s30, %s1806_s29  ;;  %p3228_p0 = scmp.ne.s32.totalorder %s3140_s22, 0 }
  0x5e   : > { %s1897_s25 = smov [#allocation7]  }
  0x5f   : > { %p1808_p7 = pnand %p1807_p8, %p3228_p0  ;;  %s1810_s26 = sshll.u32 %s1897_s25, 4  ;;  %s1811_s26 = int_to_ptr.vmem [resolvable:$false] %s1810_s26 }
  0x60   : > { %s1812_s3 = scalar_lea.vmem %s1811_s26, 8192  ;;  %p1813_p10 = scmp.lt.s32.totalorder %s3040_s30, %s1811_s26 }
  0x61   : > { %p1809_p4 = pneg %p1808_p7  ;;  %p1814_p12 = scmp.lt.s32.totalorder %s1812_s3, %s1806_s29 }
  0x63   : > { %p1815_p1 = por %p1814_p12, %p1813_p10 }
  0x65   : > { %p1816_p2 = pnand %p1815_p1, %p1809_p4 }
  0x98   : > { %300 = vxpose.xlu0.b32.start.end [1/1] (short) %v265_v4, 128 }
  0xdb   : > { %v284_v5 = vpop.trf.xlu0 }
  0xdc   : > { %1498 = vmatmul.mubr.msk.f32.vlgmr.msra.gmra.mrb[0].mxu0 %vm332_vm0, %v284_v5 }
  0xdd   : > { %499 = vmatprep.mubr.f32.mxu0 %v1896_v0 }
  0xdf   : > { %v285_v6 = vpop.trf.xlu0 }
  0xe0   : > { %1499 = vmatmul.mubr.msk.f32.gmra.mrb[2].mxu0 %vm332_vm0, %v285_v6 }
  0xe1   : > { %505 = vmatprep.mubr.f32.mxu0 %v1896_v0 }
  0xe3   : > { %v286_v7 = vpop.trf.xlu0 }
  0xe4   : > { %1500 = vmatmul.mubr.msk.f32.gmra.mrb[4].mxu0 %vm332_vm0, %v286_v7 }
  0xe5   : > { %511 = vmatprep.mubr.f32.mxu0 %v1896_v0 }
  0xe7   : > { %v287_v8 = vpop.trf.xlu0 }
  0xe8   : > { %1501 = vmatmul.mubr.msk.f32.gmra.mrb[6].mxu0 %vm332_vm0, %v287_v8 }
  0xe9   : > { %517 = vmatprep.mubr.f32.mxu0 %v1896_v0 }
  0xeb   : > { %v288_v9 = vpop.trf.xlu0 }
  0xec   : > { %1502 = vmatmul.mubr.msk.f32.gmra.mrb[8].mxu0 %vm332_vm0, %v288_v9 }
  0xed   : > { %523 = vmatprep.mubr.f32.mxu0 %v1896_v0 }
  0xef   : > { %v289_v10 = vpop.trf.xlu0 }
  0xf0   : > { %1503 = vmatmul.mubr.msk.f32.gmra.mrb[10].mxu0 %vm332_vm0, %v289_v10 }
  0xf1   : > { %529 = vmatprep.mubr.f32.mxu0 %v1896_v0 }
  0xf3   : > { %v290_v11 = vpop.trf.xlu0 }
  0xf4   : > { %1504 = vmatmul.mubr.msk.f32.gmra.mrb[12].mxu0 %vm332_vm0, %v290_v11 }
  0xf5   : > { %535 = vmatprep.mubr.f32.mxu0 %v1896_v0 }
  0xf7   : > { %v291_v12 = vpop.trf.xlu0 }
  0xf8   : > { %1505 = vmatmul.mubr.msk.f32.gmra.mrb[14].mxu0 %vm332_vm0, %v291_v12 }
  0xf9   : > { %541 = vmatprep.mubr.f32.mxu0 %v1896_v0 }
  0xfb   : > { %v292_v13 = vpop.trf.xlu0 }
  0xfc   : > { %1506 = vmatmul.mubr.msk.f32.gmra.mrb[16].mxu0 %vm332_vm0, %v292_v13 }
  0xfd   : > { %547 = vmatprep.mubr.f32.mxu0 %v1896_v0 }
  0xff   : > { %v293_v14 = vpop.trf.xlu0 }
 0x100   : > { %1507 = vmatmul.mubr.msk.f32.gmra.mrb[18].mxu0 %vm332_vm0, %v293_v14 }
 0x101   : > { %553 = vmatprep.mubr.f32.mxu0 %v1896_v0 }
 0x103   : > { %v294_v15 = vpop.trf.xlu0 }
 0x104   : > { %1508 = vmatmul.mubr.msk.f32.gmra.mrb[20].mxu0 %vm332_vm0, %v294_v15 }
 0x105   : > { %559 = vmatprep.mubr.f32.mxu0 %v1896_v0 }
 0x107   : > { %v295_v16 = vpop.trf.xlu0 }
 0x108   : > { %1509 = vmatmul.mubr.msk.f32.gmra.mrb[22].mxu0 %vm332_vm0, %v295_v16 }
 0x109   : > { %565 = vmatprep.mubr.f32.mxu0 %v1896_v0 }
 0x10b   : > { %v296_v17 = vpop.trf.xlu0 }
 0x10c   : > { %1510 = vmatmul.mubr.msk.f32.gmra.mrb[24].mxu0 %vm332_vm0, %v296_v17 }
 0x10d   : > { %571 = vmatprep.mubr.f32.mxu0 %v1896_v0 }
 0x10f   : > { %v297_v18 = vpop.trf.xlu0 }
 0x110   : > { %1511 = vmatmul.mubr.msk.f32.gmra.mrb[26].mxu0 %vm332_vm0, %v297_v18 }
 0x111   : > { %577 = vmatprep.mubr.f32.mxu0 %v1896_v0 }
 0x113   : > { %v298_v19 = vpop.trf.xlu0 }
 0x114   : > { %1512 = vmatmul.mubr.msk.f32.gmra.mrb[28].mxu0 %vm332_vm0, %v298_v19 }
 0x115   : > { %583 = vmatprep.mubr.f32.mxu0 %v1896_v0 }
 0x117   : > { %v299_v20 = vpop.trf.xlu0 }
 0x118   : > { %1513 = vmatmul.mubr.msk.f32.gmra.mrb[30].mxu0 %vm332_vm0, %v299_v20 }
 0x11b   : > { %v316_v21 = vpop.trf.xlu0 }
 0x11c   : > { %1514 = vmatmul.mubr.msk.f32.vlgmr.msra.gmra.mrb[0].mxu1 %vm332_vm0, %v316_v21 }
 0x11d   : > { %595 = vmatprep.mubr.f32.mxu1 %v1896_v0 }
 0x11f   : > { %v317_v22 = vpop.trf.xlu0 }
 0x120   : > { %1515 = vmatmul.mubr.msk.f32.gmra.mrb[2].mxu1 %vm332_vm0, %v317_v22 }
 0x121   : > { %601 = vmatprep.mubr.f32.mxu1 %v1896_v0 }
 0x123   : > { %v318_v23 = vpop.trf.xlu0 }
 0x124   : > { %1516 = vmatmul.mubr.msk.f32.gmra.mrb[4].mxu1 %vm332_vm0, %v318_v23 }
 0x125   : > { %607 = vmatprep.mubr.f32.mxu1 %v1896_v0 }
 0x127   : > { %v319_v24 = vpop.trf.xlu0 }
 0x128   : > { %1517 = vmatmul.mubr.msk.f32.gmra.mrb[6].mxu1 %vm332_vm0, %v319_v24 }
 0x129   : > { %613 = vmatprep.mubr.f32.mxu1 %v1896_v0 }
 0x12b   : > { %v320_v25 = vpop.trf.xlu0 }
 0x12c   : > { %1518 = vmatmul.mubr.msk.f32.gmra.mrb[8].mxu1 %vm332_vm0, %v320_v25 }
 0x12d   : > { %619 = vmatprep.mubr.f32.mxu1 %v1896_v0 }
 0x12f   : > { %v321_v26 = vpop.trf.xlu0 }
 0x130   : > { %1519 = vmatmul.mubr.msk.f32.gmra.mrb[10].mxu1 %vm332_vm0, %v321_v26 }
 0x131   : > { %625 = vmatprep.mubr.f32.mxu1 %v1896_v0 }
 0x133   : > { %v322_v27 = vpop.trf.xlu0 }
 0x134   : > { %1520 = vmatmul.mubr.msk.f32.gmra.mrb[12].mxu1 %vm332_vm0, %v322_v27 }
 0x135   : > { %631 = vmatprep.mubr.f32.mxu1 %v1896_v0 }
 0x137   : > { %v323_v28 = vpop.trf.xlu0 }
 0x138   : > { %1521 = vmatmul.mubr.msk.f32.gmra.mrb[14].mxu1 %vm332_vm0, %v323_v28 }
 0x139   : > { %637 = vmatprep.mubr.f32.mxu1 %v1896_v0 }
 0x13b   : > { %v324_v29 = vpop.trf.xlu0 }
 0x13c   : > { %1522 = vmatmul.mubr.msk.f32.gmra.mrb[16].mxu1 %vm332_vm0, %v324_v29 }
 0x13d   : > { %643 = vmatprep.mubr.f32.mxu1 %v1896_v0 }
 0x13f   : > { %v325_v30 = vpop.trf.xlu0 }
 0x140   : > { %1523 = vmatmul.mubr.msk.f32.gmra.mrb[18].mxu1 %vm332_vm0, %v325_v30 }
 0x141   : > { %649 = vmatprep.mubr.f32.mxu1 %v1896_v0 }
 0x143   : > { %v326_v31 = vpop.trf.xlu0 }
 0x144   : > { %1524 = vmatmul.mubr.msk.f32.gmra.mrb[20].mxu1 %vm332_vm0, %v326_v31 }
 0x145   : > { %655 = vmatprep.mubr.f32.mxu1 %v1896_v0 }
 0x147   : > { %v327_v32 = vpop.trf.xlu0 }
 0x148   : > { %1525 = vmatmul.mubr.msk.f32.gmra.mrb[22].mxu1 %vm332_vm0, %v327_v32 }
 0x149   : > { %661 = vmatprep.mubr.f32.mxu1 %v1896_v0 }
 0x14b   : > { %v328_v33 = vpop.trf.xlu0 }
 0x14c   : > { %1526 = vmatmul.mubr.msk.f32.gmra.mrb[24].mxu1 %vm332_vm0, %v328_v33 }
 0x14d   : > { %667 = vmatprep.mubr.f32.mxu1 %v1896_v0 }
 0x14f   : > { %v329_v34 = vpop.trf.xlu0 }
 0x150   : > { %1527 = vmatmul.mubr.msk.f32.gmra.mrb[26].mxu1 %vm332_vm0, %v329_v34 }
 0x151   : > { %673 = vmatprep.mubr.f32.mxu1 %v1896_v0 }
 0x153   : > { %v330_v35 = vpop.trf.xlu0 }
 0x154   : > { %1528 = vmatmul.mubr.msk.f32.gmra.mrb[28].mxu1 %vm332_vm0, %v330_v35 }
 0x155   : > { %679 = vmatprep.mubr.f32.mxu1 %v1896_v0 }
 0x157   : > { %v331_v36 = vpop.trf.xlu0 }
 0x158   : > { %1529 = vmatmul.mubr.msk.f32.gmra.mrb[30].mxu1 %vm332_vm0, %v331_v36 }
 0x1af   : > { %v495_v37 = vpop.f32.mrb[0].mxu0 }
 0x1b0   : > { %v497_v38 = vpop.f32.mrb[1].mxu0  ;;  %v686_v41 = vsub.f32 1.0, %v495_v37 }
 0x1b1   : > { %v687_v42 = vsub.f32 1.0, %v497_v38 }
 0x1b2   : > { %v2146_v47 = vmax.f32 %v686_v41, 0.0 }
 0x1b3   : > { %v501_v39 = vpop.f32.mrb[2].mxu0  ;;  %v2150_v50 = vmax.f32 %v687_v42, 0.0 }
 0x1b4   : > { %v503_v40 = vpop.f32.mrb[3].mxu0  ;;  %v688_v48 = vsub.f32 1.0, %v501_v39 }
 0x1b5   : > { %v689_v51 = vsub.f32 1.0, %v503_v40 }
 0x1b6   : > { %v2158_v59 = vmax.f32 %v688_v48, 0.0 }
 0x1b7   : > { %v507_v43 = vpop.f32.mrb[4].mxu0  ;;  %v2162_v61 = vmax.f32 %v689_v51, 0.0 }
 0x1b8   : > { %v690_v44 = vsub.f32 1.0, %v507_v43  ;;  %v509_v45 = vpop.f32.mrb[5].mxu0 }
 0x1b9   : > { %v691_v46 = vsub.f32 1.0, %v509_v45 }
 0x1ba   : > { %v2148_v49 = vmax.f32 %v690_v44, 0.0 }
 0x1bb   : > { %v2152_v52 = vmax.f32 %v691_v46, 0.0  ;;  %v513_v53 = vpop.f32.mrb[6].mxu0 }
 0x1bc   : > { %v814_v54 = vmin.f32 %v2146_v47, %v2148_v49  ;;  %v692_v55 = vsub.f32 1.0, %v513_v53  ;;  %v515_v56 = vpop.f32.mrb[7].mxu0 }
 0x1bd   : > { %v851_v57 = vmin.f32 %v2150_v50, %v2152_v52  ;;  %v693_v58 = vsub.f32 1.0, %v515_v56 }
 0x1be   : > { %v2160_v60 = vmax.f32 %v692_v55, 0.0 }
 0x1bf   : > { %v2164_v62 = vmax.f32 %v693_v58, 0.0  ;;  %v519_v63 = vpop.f32.mrb[8].mxu0 }
 0x1c0   : > { %v815_v0 = vmin.f32 %v2158_v59, %v2160_v60  ;;  %v694_v1 = vsub.f32 1.0, %v519_v63  ;;  %v521_v2 = vpop.f32.mrb[9].mxu0 }
 0x1c1   : > { %v852_v3 = vmin.f32 %v2162_v61, %v2164_v62  ;;  %v695_v4 = vsub.f32 1.0, %v521_v2 }
 0x1c2   : > { %v2170_v5 = vmax.f32 %v694_v1, 0.0 }
 0x1c3   : > { %v2172_v6 = vmax.f32 %v695_v4, 0.0  ;;  %v525_v7 = vpop.f32.mrb[10].mxu0 }
 0x1c4   : > { %v2175_v8 = vmin.f32 %v814_v54, %v2170_v5  ;;  %v2177_v9 = vpop.f32.mrb[11].mxu0  ;;  %v696_v38 = vsub.f32 1.0, %v525_v7 }
 0x1c5   : > { %v2180_v10 = vmin.f32 %v851_v57, %v2172_v6 }
 0x1c6   : > { %v2214_v43 = vmax.f32 %v696_v38, 0.0 }
 0x1c7   : > { %v531_v11 = vpop.f32.mrb[12].mxu0 }
 0x1c8   : > { %v2182_v12 = vpop.f32.mrb[13].mxu0  ;;  %v698_v41 = vsub.f32 1.0, %v531_v11  ;;  %v817_v56 = vmin.f32 %v815_v0, %v2214_v43 }
 0x1ca   : > { %v2220_v53 = vmax.f32 %v698_v41, 0.0 }
 0x1cb   : > { %v537_v13 = vpop.f32.mrb[14].mxu0 }
 0x1cc   : > { %v2184_v14 = vpop.f32.mrb[15].mxu0  ;;  %v700_v40 = vsub.f32 1.0, %v537_v13  ;;  %v697_v13 = vsub.f32 1.0, %v2177_v9 }
 0x1ce   : > { %v2218_v48 = vmax.f32 %v700_v40, 0.0  ;;  %v699_v40 = vsub.f32 1.0, %v2182_v12 }
 0x1cf   : > { %v543_v15 = vpop.f32.mrb[16].mxu0 }
 0x1d0   : > { %v2186_v16 = vpop.f32.mrb[17].mxu0  ;;  %v702_v46 = vsub.f32 1.0, %v543_v15  ;;  %v819_v4 = vmin.f32 %v817_v56, %v2218_v48  ;;  %v818_v15 = vmin.f32 %v2175_v8, %v2220_v53 }
 0x1d2   : > { %v2227_v1 = vmax.f32 %v702_v46, 0.0  ;;  %v2249_v46 = vmax.f32 %v697_v13, 0.0 }
 0x1d3   : > { %v549_v17 = vpop.f32.mrb[18].mxu0 }
 0x1d4   : > { %v2188_v18 = vpop.f32.mrb[19].mxu0  ;;  %v704_v44 = vsub.f32 1.0, %v549_v17  ;;  %3148 = vst [vmem:[#allocation11_spill] sm:$0xff] %v2249_v46 }
 0x1d6   : > { %v2223_v57 = vmax.f32 %v704_v44, 0.0 }
 0x1d7   : > { %v555_v19 = vpop.f32.mrb[20].mxu0 }
 0x1d8   : > { %v2190_v20 = vpop.f32.mrb[21].mxu0  ;;  %v706_v54 = vsub.f32 1.0, %v555_v19 }
 0x1da   : > { %v2235_v17 = vmax.f32 %v706_v54, 0.0 }
 0x1db   : > { %v561_v21 = vpop.f32.mrb[22].mxu0 }
 0x1dc   : > { %v2192_v22 = vpop.f32.mrb[23].mxu0  ;;  %v708_v51 = vsub.f32 1.0, %v561_v21  ;;  %v821_v21 = vmin.f32 %v819_v4, %v2223_v57 }
 0x1de   : > { %v2230_v7 = vmax.f32 %v708_v51, 0.0  ;;  %v701_v51 = vsub.f32 1.0, %v2184_v14 }
 0x1df   : > { %v567_v23 = vpop.f32.mrb[24].mxu0 }
 0x1e0   : > { %v2194_v24 = vpop.f32.mrb[25].mxu0  ;;  %v710_v2 = vsub.f32 1.0, %v567_v23  ;;  %v823_v8 = vmin.f32 %v821_v21, %v2230_v7 }
 0x1e2   : > { %v2244_v41 = vmax.f32 %v710_v2, 0.0 }
 0x1e3   : > { %v573_v25 = vpop.f32.mrb[26].mxu0 }
 0x1e4   : > { %v2196_v26 = vpop.f32.mrb[27].mxu0  ;;  %v712_v58 = vsub.f32 1.0, %v573_v25 }
 0x1e6   : > { %v2238_v25 = vmax.f32 %v712_v58, 0.0 }
 0x1e7   : > { %v579_v27 = vpop.f32.mrb[28].mxu0 }
 0x1e8   : > { %v2198_v28 = vpop.f32.mrb[29].mxu0  ;;  %v714_v0 = vsub.f32 1.0, %v579_v27  ;;  %v825_v12 = vmin.f32 %v823_v8, %v2238_v25 }
 0x1ea   : > { %v2253_v54 = vmax.f32 %v714_v0, 0.0 }
 0x1eb   : > { %v585_v29 = vpop.f32.mrb[30].mxu0 }
 0x1ec   : > { %v2200_v30 = vpop.f32.mrb[31].mxu0  ;;  %v716_v11 = vsub.f32 1.0, %v585_v29  ;;  %v820_v29 = vmin.f32 %v818_v15, %v2227_v1 }
 0x1ee   : > { %v2247_v44 = vmax.f32 %v716_v11, 0.0  ;;  %v2261_v11 = vmax.f32 %v699_v40, 0.0 }
 0x1ef   : > { %v591_v31 = vpop.f32.mrb[0].mxu1 }
 0x1f0   : > { %v2202_v32 = vpop.f32.mrb[1].mxu1  ;;  %v718_v9 = vsub.f32 1.0, %v591_v31  ;;  %3149 = vst [vmem:[#allocation12_spill] sm:$0xff] %v2261_v11  ;;  %v827_v14 = vmin.f32 %v825_v12, %v2247_v44 }
 0x1f2   : > { %v2264_v13 = vmax.f32 %v718_v9, 0.0 }
 0x1f3   : > { %v597_v33 = vpop.f32.mrb[2].mxu1 }
 0x1f4   : > { %v2204_v34 = vpop.f32.mrb[3].mxu1  ;;  %v720_v38 = vsub.f32 1.0, %v597_v33  ;;  %v822_v33 = vmin.f32 %v820_v29, %v2235_v17 }
 0x1f6   : > { %v2256_v58 = vmax.f32 %v720_v38, 0.0  ;;  %v703_v38 = vsub.f32 1.0, %v2186_v16 }
 0x1f7   : > { %v2206_v35 = vpop.f32.mrb[4].mxu1 }
 0x1f8   : > { %v2208_v36 = vpop.f32.mrb[5].mxu1  ;;  %v722_v31 = vsub.f32 1.0, %v2206_v35  ;;  %v854_v35 = vmin.f32 %v852_v3, %v2249_v46  ;;  %v829_v9 = vmin.f32 %v827_v14, %v2256_v58  ;;  %v705_v3 = vsub.f32 1.0, %v2188_v18 }
 0x1f9   : > { %v2296_v14 = vmax.f32 %v703_v38, 0.0  ;;  %v709_v46 = vsub.f32 1.0, %v2192_v22  ;;  %v715_v22 = vsub.f32 1.0, %v2198_v28 }
 0x1fa   : > { %v2279_v8 = vmax.f32 %v722_v31, 0.0 }
 0x1fb   : > { %v609_v37 = vpop.f32.mrb[6].mxu1  ;;  %3152 = vst [vmem:[#allocation15_spill] sm:$0xff] %v2296_v14 }
 0x1fc   : > { %v2210_v39 = vpop.f32.mrb[7].mxu1  ;;  %v724_v27 = vsub.f32 1.0, %v609_v37  ;;  %v824_v37 = vmin.f32 %v822_v33, %v2244_v41 }
 0x1fe   : > { %v2267_v15 = vmax.f32 %v724_v27, 0.0  ;;  %v826_v40 = vmin.f32 %v824_v37, %v2253_v54 }
 0x1ff   : > { %v2212_v42 = vpop.f32.mrb[8].mxu1 }
 0x200   : > { %v2216_v45 = vpop.f32.mrb[9].mxu1  ;;  %v726_v0 = vsub.f32 1.0, %v2212_v42  ;;  %v828_v16 = vmin.f32 %v826_v40, %v2264_v13  ;;  %v831_v12 = vmin.f32 %v829_v9, %v2267_v15 }
 0x202   : > { %v2291_v37 = vmax.f32 %v726_v0, 0.0 }
 0x203   : > { %v621_v55 = vpop.f32.mrb[10].mxu1 }
 0x204   : > { %v2225_v63 = vpop.f32.mrb[11].mxu1  ;;  %v728_v2 = vsub.f32 1.0, %v621_v55  ;;  %v2274_v55 = vmax.f32 %v701_v51, 0.0  ;;  %v707_v51 = vsub.f32 1.0, %v2190_v20  ;;  %v830_v20 = vmin.f32 %v828_v16, %v2279_v8 }
 0x206   : > { %3150 = vst [vmem:[#allocation13_spill] sm:$0xff] %v2274_v55  ;;  %v2281_v27 = vmax.f32 %v728_v2, 0.0 }
 0x207   : > { %v627_v19 = vpop.f32.mrb[12].mxu1 }
 0x208   : > { %v2240_v23 = vpop.f32.mrb[13].mxu1  ;;  %v730_v42 = vsub.f32 1.0, %v627_v19  ;;  %v856_v19 = vmin.f32 %v854_v35, %v2274_v55  ;;  %v833_v40 = vmin.f32 %v831_v12, %v2281_v27  ;;  %v713_v35 = vsub.f32 1.0, %v2196_v26 }
 0x209   : > { %v717_v26 = vsub.f32 1.0, %v2200_v30 }
 0x20b   : > { %v633_v56 = vpop.f32.mrb[14].mxu1 }
 0x20c   : > { %v2259_v4 = vpop.f32.mrb[15].mxu1  ;;  %v732_v21 = vsub.f32 1.0, %v633_v56  ;;  %v855_v56 = vmin.f32 %v2180_v10, %v2261_v11  ;;  %v711_v10 = vsub.f32 1.0, %v2194_v24  ;;  %v2302_v11 = vmax.f32 %v730_v42, 0.0 }
 0x20d   : > { %v832_v24 = vmin.f32 %v830_v20, %v2291_v37 }
 0x20e   : > { %v2293_v31 = vmax.f32 %v732_v21, 0.0  ;;  %v2306_v21 = vmax.f32 %v705_v3, 0.0  ;;  %v857_v42 = vmin.f32 %v855_v56, %v2296_v14  ;;  %v2321_v3 = vmax.f32 %v711_v10, 0.0 }
 0x20f   : > { %v639_v29 = vpop.f32.mrb[16].mxu1  ;;  %v834_v28 = vmin.f32 %v832_v24, %v2302_v11  ;;  %v723_v10 = vsub.f32 1.0, %v2208_v36  ;;  %v2334_v14 = vmax.f32 %v713_v35, 0.0  ;;  %v725_v36 = vsub.f32 1.0, %v2210_v39 }
 0x210   : > { %v2283_v33 = vpop.f32.mrb[17].mxu1  ;;  %3151 = vst [vmem:[#allocation14_spill] sm:$0xff] %v2293_v31  ;;  %v734_v2 = vsub.f32 1.0, %v639_v29  ;;  %v2308_v29 = vmax.f32 %v707_v51, 0.0  ;;  %v835_v38 = vmin.f32 %v833_v40, %v2293_v31  ;;  %3154 = vst [vmem:[#allocation17_spill] sm:$0xff] %v2321_v3  ;;  %v719_v51 = vsub.f32 1.0, %v2202_v32 }
 0x211   : > { %v721_v32 = vsub.f32 1.0, %v2204_v34 }
 0x212   : > { %3153 = vst [vmem:[#allocation16_spill] sm:$0xff] %v2308_v29  ;;  %v2314_v16 = vmax.f32 %v734_v2, 0.0  ;;  %v859_v56 = vmin.f32 %v857_v42, %v2308_v29  ;;  %v2342_v31 = vmax.f32 %v719_v51, 0.0  ;;  %v2345_v42 = vmax.f32 %v717_v26, 0.0 }
 0x213   : > { %v645_v18 = vpop.f32.mrb[18].mxu1 }
 0x214   : > { %v736_v0 = vsub.f32 1.0, %v645_v18  ;;  %v2304_v9 = vpop.f32.mrb[19].mxu1  ;;  %v2319_v18 = vmax.f32 %v709_v46, 0.0  ;;  %v2331_v46 = vmax.f32 %v715_v22, 0.0  ;;  %v836_v30 = vmin.f32 %v834_v28, %v2314_v16  ;;  %3156 = vst [vmem:[#allocation19_spill] sm:$0xff] %v2342_v31  ;;  %3157 = vst [vmem:[#allocation20_spill] sm:$0xff] %v2345_v42 }
 0x216   : > { %v2316_v12 = vmax.f32 %v736_v0, 0.0  ;;  %v858_v0 = vmin.f32 %v856_v19, %v2306_v21  ;;  %3155 = vst [vmem:[#allocation18_spill] sm:$0xff] %v2331_v46  ;;  %v727_v19 = vsub.f32 1.0, %v2216_v45  ;;  %v729_v45 = vsub.f32 1.0, %v2225_v63 }
 0x217   : > { %v651_v55 = vpop.f32.mrb[20].mxu1 }
 0x218   : > { %v2327_v20 = vmin.f32 %v835_v38, %v2316_v12  ;;  %v738_v2 = vsub.f32 1.0, %v651_v55  ;;  %v653_v40 = vpop.f32.mrb[21].mxu1  ;;  %v860_v38 = vmin.f32 %v858_v0, %v2319_v18  ;;  %v861_v55 = vmin.f32 %v859_v56, %v2321_v3 }
 0x219   : > { %v731_v0 = vsub.f32 1.0, %v2240_v23  ;;  %v2354_v56 = vmax.f32 %v721_v32, 0.0  ;;  %v2360_v3 = vmax.f32 %v727_v19, 0.0  ;;  %v739_v19 = vsub.f32 1.0, %v653_v40 }
 0x21a   : > { %v2338_v24 = vmax.f32 %v738_v2, 0.0  ;;  %v863_v28 = vmin.f32 %v861_v55, %v2331_v46  ;;  %v2350_v2 = vmax.f32 %v723_v10, 0.0  ;;  %v862_v51 = vmin.f32 %v860_v38, %v2334_v14 }
 0x21b   : > { %v657_v22 = vpop.f32.mrb[22].mxu1  ;;  %3159 = vst [vmem:[#allocation22_spill] sm:$0xff] %v2354_v56  ;;  %3160 = vst [vmem:[#allocation23_spill] sm:$0xff] %v2360_v3  ;;  %v2364_v55 = vmax.f32 %v725_v36, 0.0 }
 0x21c   : > { %v838_v35 = vmin.f32 %v836_v30, %v2338_v24  ;;  %v740_v34 = vsub.f32 1.0, %v657_v22  ;;  %v659_v29 = vpop.f32.mrb[23].mxu1  ;;  %3158 = vst [vmem:[#allocation21_spill] sm:$0xff] %v2350_v2  ;;  %v865_v39 = vmin.f32 %v863_v28, %v2342_v31  ;;  %v735_v30 = vsub.f32 1.0, %v2283_v33 }
 0x21d   : > { %v864_v10 = vmin.f32 %v862_v51, %v2345_v42  ;;  %3161 = vst [vmem:[#allocation24_spill] sm:$0xff] %v2364_v55  ;;  %v733_v28 = vsub.f32 1.0, %v2259_v4  ;;  %v2373_v33 = vmax.f32 %v729_v45, 0.0 }
 0x21e   : > { %v2357_v26 = vmax.f32 %v740_v34, 0.0  ;;  %v867_v63 = vmin.f32 %v865_v39, %v2350_v2  ;;  %v2369_v34 = vmax.f32 %v731_v0, 0.0  ;;  %v2378_v51 = vmax.f32 %v735_v30, 0.0 }
 0x21f   : > { %v663_v22 = vpop.f32.mrb[24].mxu1  ;;  %v866_v31 = vmin.f32 %v864_v10, %v2354_v56  ;;  %3163 = vst [vmem:[#allocation26_spill] sm:$0xff] %v2373_v33  ;;  %v2384_v45 = vmax.f32 %v733_v28, 0.0  ;;  %v741_v2 = vsub.f32 1.0, %v659_v29 }
 0x220   : > { %v839_v23 = vmin.f32 %v2327_v20, %v2357_v26  ;;  %v742_v32 = vsub.f32 1.0, %v663_v22  ;;  %v665_v38 = vpop.f32.mrb[25].mxu1  ;;  %3162 = vst [vmem:[#allocation25_spill] sm:$0xff] %v2369_v34  ;;  %v869_v36 = vmin.f32 %v867_v63, %v2360_v3  ;;  %3164 = vst [vmem:[#allocation27_spill] sm:$0xff] %v2378_v51  ;;  %v737_v20 = vsub.f32 1.0, %v2304_v9 }
 0x221   : > { %v743_v22 = vsub.f32 1.0, %v665_v38  ;;  %v868_v0 = vmin.f32 %v866_v31, %v2364_v55  ;;  %3165 = vst [vmem:[#allocation28_spill] sm:$0xff] %v2384_v45 }
 0x222   : > { %v2375_v46 = vmax.f32 %v742_v32, 0.0  ;;  %v871_v10 = vmin.f32 %v869_v36, %v2369_v34  ;;  %v2386_v32 = vmax.f32 %v739_v19, 0.0  ;;  %v2390_v38 = vmax.f32 %v737_v20, 0.0 }
 0x223   : > { %v669_v42 = vpop.f32.mrb[26].mxu1  ;;  %v870_v30 = vmin.f32 %v868_v0, %v2373_v33  ;;  %v2392_v3 = vmax.f32 %v743_v22, 0.0  ;;  %v2396_v36 = vmax.f32 %v741_v2, 0.0 }
 0x224   : > { %v840_v39 = vmin.f32 %v838_v35, %v2375_v46  ;;  %v744_v4 = vsub.f32 1.0, %v669_v42  ;;  %v671_v40 = vpop.f32.mrb[27].mxu1  ;;  %3166 = vst [vmem:[#allocation29_spill] sm:$0xff] %v2386_v32  ;;  %v873_v9 = vmin.f32 %v871_v10, %v2378_v51  ;;  %3167 = vst [vmem:[#allocation30_spill] sm:$0xff] %v2390_v38 }
 0x225   : > { %3168 = vst [vmem:[#allocation31_spill] sm:$0xff] %v2392_v3  ;;  %v745_v31 = vsub.f32 1.0, %v671_v40  ;;  %v872_v28 = vmin.f32 %v870_v30, %v2384_v45  ;;  %3169 = vst [vmem:[#allocation32_spill] sm:$0xff] %v2396_v36 }
 0x226   : > { %v808_v63 = vmax.f32 %v744_v4, 0.0  ;;  %v875_v19 = vmin.f32 %v873_v9, %v2386_v32 }
 0x227   : > { %v675_v35 = vpop.f32.mrb[28].mxu1  ;;  %v874_v4 = vmin.f32 %v872_v28, %v2390_v38  ;;  %v2400_v10 = vmax.f32 %v745_v31, 0.0 }
 0x228   : > { %v841_v42 = vmin.f32 %v839_v23, %v808_v63  ;;  %v746_v55 = vsub.f32 1.0, %v675_v35  ;;  %v677_v56 = vpop.f32.mrb[29].mxu1  ;;  %v877_v20 = vmin.f32 %v875_v19, %v2392_v3 }
 0x229   : > { %v747_v29 = vsub.f32 1.0, %v677_v56  ;;  %v876_v30 = vmin.f32 %v874_v4, %v2396_v36 }
 0x22a   : > { %v810_v0 = vmax.f32 %v746_v55, 0.0 }
 0x22b   : > { %v2402_v22 = vmax.f32 %v747_v29, 0.0  ;;  %v681_v40 = vpop.f32.mrb[30].mxu1  ;;  %v878_v56 = vmin.f32 %v876_v30, %v2400_v10 }
 0x22c   : > { %v842_v23 = vmin.f32 %v840_v39, %v810_v0  ;;  %v748_v35 = vsub.f32 1.0, %v681_v40  ;;  %v683_v51 = vpop.f32.mrb[31].mxu1 }
 0x22d   : > { %v879_v9 = vmin.f32 %v877_v20, %v2402_v22  ;;  %v749_v2 = vsub.f32 1.0, %v683_v51 }
 0x22e   : > { %v812_v32 = vmax.f32 %v748_v35, 0.0 }
 0x22f   : > { %v2407_v55 = vmax.f32 %v749_v2, 0.0 }
 0x230   : > { %v843_v28 = vmin.f32 %v841_v42, %v812_v32 }
 0x231   : > { %v880_v31 = vmin.f32 %v878_v56, %v2407_v55 }
 0x232   : > { %v844_v19 = vmin.f32 %v842_v23, %v843_v28 }
 0x233   : > { %v881_v29 = vmin.f32 %v879_v9, %v880_v31 }
 0x234   : > { %v845_v3 = vrot.slane %v844_v19, 4 }
 0x235   : > { %v882_v38 = vrot.slane %v881_v29, 4 }
 0x236   : > { %v846_v39 = vmin.f32 %v844_v19, %v845_v3 }
 0x237   : > { %v883_v40 = vmin.f32 %v881_v29, %v882_v38 }
 0x238   : > { %v847_v45 = vrot.slane %v846_v39, 2 }
 0x239   : > { %v884_v34 = vrot.slane %v883_v40, 2 }
 0x23a   : > { %v848_v4 = vmin.f32 %v846_v39, %v847_v45 }
 0x23b   : > { %v885_v36 = vmin.f32 %v883_v40, %v884_v34 }
 0x23c   : > { %v849_v20 = vrot.slane %v848_v4, 1 }
 0x23d   : > { %v886_v51 = vrot.slane %v885_v36, 1 }
 0x23e   : > { %v850_v35 = vmin.f32 %v848_v4, %v849_v20 }
 0x23f   : > { %v887_v33 = vmin.f32 %v885_v36, %v886_v51 }
 0x240   : > { %v888_v30 = vadd.f32 2e-05, %v850_v35 }
 0x241   : > { %v889_v2 = vadd.f32 2e-05, %v887_v33 }
 0x242   : > { %1610 = vrcp.f32 %v888_v30 }
 0x243   : > { %1612 = vrcp.f32 %v889_v2 }
 0x24c   : > { %v1611_v42 = vpop.eup %1610 }
 0x24d   : > { %v2410_v56 = vmul.f32 -10.0, %v1611_v42  ;;  %v1613_v38 = vpop.eup %1612 }
 0x24e   : > { %v2422_v36 = vmul.f32 -10.0, %v1613_v38 }
 0x24f   : > { %v894_v23 = vmul.f32 %v2410_v56, %v2146_v47  ;;  %v896_v3 = vmul.f32 %v2410_v56, %v2158_v59  ;;  %v898_v34 = vmul.f32 %v2410_v56, %v2148_v49  ;;  %v900_v45 = vmul.f32 %v2410_v56, %v2160_v60 }
 0x250   : > { %v902_v33 = vmul.f32 %v2410_v56, %v2170_v5  ;;  %v2426_v9 = vmul.f32 %v2410_v56, %v2316_v12  ;;  %v2430_v47 = vmul.f32 %v2410_v56, %v2338_v24  ;;  %v2434_v49 = vmul.f32 %v2410_v56, %v2357_v26 }
 0x251   : > { %v2438_v59 = vmul.f32 %v2410_v56, %v2375_v46  ;;  %v2441_v60 = vmul.f32 %v2410_v56, %v808_v63  ;;  %v2444_v5 = vmul.f32 %v2410_v56, %v810_v0  ;;  %v2447_v12 = vmul.f32 %v2410_v56, %v812_v32 }
 0x252   : > { %v958_v28 = vmul.f32 1.442695, %v894_v23  ;;  %v962_v24 = vmul.f32 1.442695, %v896_v3  ;;  %v2451_v31 = vmul.f32 %v2422_v36, %v2150_v50  ;;  %v966_v26 = vmul.f32 1.442695, %v898_v34 }
 0x253   : > { %v2455_v46 = vmul.f32 %v2422_v36, %v2162_v61  ;;  %v904_v63 = vmul.f32 %v2410_v56, %v2214_v43  ;;  %v970_v0 = vmul.f32 1.442695, %v900_v45  ;;  %v906_v32 = vmul.f32 %v2410_v56, %v2220_v53 }
 0x254   : > { %1614 = vpow2.f32 %v958_v28  ;;  %v974_v19 = vmul.f32 1.442695, %v902_v33  ;;  %v908_v50 = vmul.f32 %v2410_v56, %v2218_v48  ;;  %v910_v61 = vmul.f32 %v2410_v56, %v2227_v1 }
 0x255   : > { %1616 = vpow2.f32 %v962_v24  ;;  %v978_v29 = vmul.f32 1.442695, %v904_v63  ;;  %v982_v39 = vmul.f32 1.442695, %v906_v32  ;;  %v912_v43 = vmul.f32 %v2410_v56, %v2223_v57 }
 0x256   : > { %1618 = vpow2.f32 %v966_v26  ;;  %v2469_v40 = vmul.f32 %v2422_v36, %v2152_v52  ;;  %v986_v53 = vmul.f32 1.442695, %v908_v50  ;;  %v2473_v4 = vmul.f32 %v2422_v36, %v2164_v62 }
 0x257   : > { %1620 = vpow2.f32 %v970_v0  ;;  %v2477_v48 = vmul.f32 %v2422_v36, %v2172_v6  ;;  %v914_v57 = vmul.f32 %v2410_v56, %v2235_v17  ;;  %v990_v52 = vmul.f32 1.442695, %v910_v61 }
 0x258   : > { %1622 = vpow2.f32 %v974_v19  ;;  %v916_v62 = vmul.f32 %v2410_v56, %v2230_v7  ;;  %v994_v6 = vmul.f32 1.442695, %v912_v43  ;;  %v918_v42 = vmul.f32 %v2410_v56, %v2244_v41 }
 0x259   : > { %1624 = vpow2.f32 %v978_v29  ;;  %v998_v17 = vmul.f32 1.442695, %v914_v57  ;;  %v920_v34 = vmul.f32 %v2410_v56, %v2238_v25  ;;  %v922_v45 = vmul.f32 %v2410_v56, %v2253_v54 }
 0x25a   : > { %1626 = vpow2.f32 %v982_v39  ;;  %v1002_v7 = vmul.f32 1.442695, %v916_v62  ;;  %v1006_v41 = vmul.f32 1.442695, %v918_v42  ;;  %v2508_v28 = vmul.f32 %v2422_v36, %v2402_v22 }
 0x25b   : > { %1628 = vpow2.f32 %v986_v53  ;;  %v2512_v24 = vmul.f32 %v2422_v36, %v2407_v55  ;;  %v924_v54 = vmul.f32 %v2410_v56, %v2247_v44  ;;  %v1010_v63 = vmul.f32 1.442695, %v920_v34  ;;  %v3170_v34 = vld [vmem:[#allocation11_spill] sm:$0xff] }
 0x25c   : > { %1630 = vpow2.f32 %v990_v52  ;;  %v926_v0 = vmul.f32 %v2410_v56, %v2264_v13  ;;  %v928_v55 = vmul.f32 %v2410_v56, %v2256_v58  ;;  %v1014_v19 = vmul.f32 1.442695, %v922_v45 }
 0x25d   : > { %1632 = vpow2.f32 %v994_v6  ;;  %v1018_v44 = vmul.f32 1.442695, %v924_v54  ;;  %v930_v61 = vmul.f32 %v2410_v56, %v2279_v8  ;;  %v932_v58 = vmul.f32 %v2410_v56, %v2267_v15 }
 0x25e   : > { %v2479_v1 = vpop.eup %1614  ;;  %1634 = vpow2.f32 %v998_v17  ;;  %v1022_v39 = vmul.f32 1.442695, %v926_v0  ;;  %v1026_v53 = vmul.f32 1.442695, %v928_v55  ;;  %v960_v52 = vmul.f32 1.442695, %v2451_v31 }
 0x25f   : > { %v2481_v20 = vpop.eup %1616  ;;  %1636 = vpow2.f32 %v1002_v7  ;;  %v964_v62 = vmul.f32 1.442695, %v2455_v46  ;;  %v934_v8 = vmul.f32 %v2410_v56, %v2291_v37  ;;  %v1030_v6 = vmul.f32 1.442695, %v930_v61  ;;  %v3173_v55 = vld [vmem:[#allocation13_spill] sm:$0xff] }
 0x260   : > { %v1086_v51 = vadd.f32 %v2481_v20, %v2479_v1  ;;  %v2487_v35 = vpop.eup %1618  ;;  %1638 = vpow2.f32 %v1006_v41  ;;  %v968_v15 = vmul.f32 1.442695, %v2469_v40  ;;  %v936_v31 = vmul.f32 %v2410_v56, %v2281_v27  ;;  %v3171_v41 = vld [vmem:[#allocation12_spill] sm:$0xff] }
 0x261   : > { %v2492_v2 = vpop.eup %1620  ;;  %1640 = vpow2.f32 %v1010_v63  ;;  %v1034_v17 = vmul.f32 1.442695, %v932_v58  ;;  %v905_v37 = vmul.f32 %v2422_v36, %v3170_v34  ;;  %v972_v7 = vmul.f32 1.442695, %v2473_v4  ;;  %v3172_v63 = vld [vmem:[#allocation14_spill] sm:$0xff] }
 0x262   : > { %v1087_v30 = vadd.f32 %v2487_v35, %v1086_v51  ;;  %v2497_v3 = vpop.eup %1622  ;;  %1642 = vpow2.f32 %v1014_v19  ;;  %v938_v45 = vmul.f32 %v2410_v56, %v2302_v11  ;;  %v1038_v40 = vmul.f32 1.442695, %v934_v8 }
 0x263   : > { %v2504_v33 = vpop.eup %1624  ;;  %1644 = vpow2.f32 %v1018_v44  ;;  %v976_v54 = vmul.f32 1.442695, %v2477_v48  ;;  %v940_v0 = vmul.f32 %v2410_v56, %v3172_v63  ;;  %v1042_v4 = vmul.f32 1.442695, %v936_v31 }
 0x264   : > { %v1088_v23 = vadd.f32 %v2492_v2, %v1087_v30  ;;  %v2515_v26 = vpop.eup %1626  ;;  %1646 = vpow2.f32 %v1022_v39  ;;  %v909_v19 = vmul.f32 %v2422_v36, %v3173_v55  ;;  %v942_v44 = vmul.f32 %v2410_v56, %v2314_v16 }
 0x265   : > { %v2522_v22 = vpop.eup %1628  ;;  %1648 = vpow2.f32 %v1026_v53  ;;  %v1046_v61 = vmul.f32 1.442695, %v938_v45  ;;  %v913_v16 = vmul.f32 %v2422_v36, %v2306_v21  ;;  %v1058_v21 = vmul.f32 1.442695, %v2426_v9 }
 0x266   : > { %v1089_v38 = vadd.f32 %v2497_v3, %v1088_v23  ;;  %v2527_v29 = vpop.eup %1630  ;;  %1650 = vpow2.f32 %v960_v52  ;;  %v1050_v52 = vmul.f32 1.442695, %v940_v0  ;;  %v988_v56 = vmul.f32 1.442695, %v909_v19 }
 0x267   : > { %v2532_v43 = vpop.eup %1632  ;;  %1652 = vpow2.f32 %v964_v62 }
 0x268   : > { %v1090_v25 = vadd.f32 %v2504_v33, %v1089_v38  ;;  %v2538_v51 = vpop.eup %1634  ;;  %1654 = vpow2.f32 %v1030_v6 }
 0x269   : > { %v2544_v42 = vpop.eup %1636  ;;  %1656 = vpow2.f32 %v968_v15 }
 0x26a   : > { %v1091_v32 = vadd.f32 %v2515_v26, %v1090_v25  ;;  %v2550_v46 = vpop.eup %1638  ;;  %v907_v25 = vmul.f32 %v2422_v36, %v3171_v41  ;;  %1658 = vpow2.f32 %v1034_v17  ;;  %v3175_v17 = vld [vmem:[#allocation16_spill] sm:$0xff]  ;;  %v996_v41 = vmul.f32 1.442695, %v913_v16 }
 0x26b   : > { %v2558_v27 = vpop.eup %1640  ;;  %1660 = vpow2.f32 %v972_v7 }
 0x26c   : > { %v1092_v50 = vadd.f32 %v2522_v22, %v1091_v32  ;;  %v2566_v11 = vpop.eup %1642  ;;  %1662 = vpow2.f32 %v1038_v40  ;;  %v984_v58 = vmul.f32 1.442695, %v907_v25 }
 0x26d   : > { %v2573_v39 = vpop.eup %1644  ;;  %1664 = vpow2.f32 %v976_v54  ;;  %v1062_v54 = vmul.f32 1.442695, %v2430_v47 }
 0x26e   : > { %v1093_v13 = vadd.f32 %v2527_v29, %v1092_v50  ;;  %v980_v50 = vmul.f32 1.442695, %v905_v37  ;;  %1666 = vpow2.f32 %v1042_v4  ;;  %v3176_v4 = vld [vmem:[#allocation17_spill] sm:$0xff] }
 0x270   : > { %v1094_v57 = vadd.f32 %v2532_v43, %v1093_v13  ;;  %v3174_v13 = vld [vmem:[#allocation15_spill] sm:$0xff]  ;;  %1668 = vpow2.f32 %v980_v50 }
 0x271   : > { %v911_v53 = vmul.f32 %v2422_v36, %v3174_v13  ;;  %1670 = vpow2.f32 %v1046_v61  ;;  %v921_v61 = vmul.f32 %v2422_v36, %v2334_v14  ;;  %v1074_v14 = vmul.f32 1.442695, %v2441_v60 }
 0x272   : > { %v1095_v30 = vadd.f32 %v2538_v51, %v1094_v57  ;;  %v2577_v57 = vpop.eup %1646  ;;  %1672 = vpow2.f32 %v984_v58 }
 0x273   : > { %v2580_v8 = vpop.eup %1648  ;;  %v992_v34 = vmul.f32 1.442695, %v911_v53  ;;  %1674 = vpow2.f32 %v1050_v52  ;;  %v1070_v53 = vmul.f32 1.442695, %v2438_v59 }
 0x274   : > { %v1096_v23 = vadd.f32 %v2544_v42, %v1095_v30  ;;  %v2584_v6 = vpop.eup %1650  ;;  %v1054_v30 = vmul.f32 1.442695, %v942_v44  ;;  %1676 = vpow2.f32 %v988_v56 }
 0x275   : > { %v2587_v31 = vpop.eup %1652 }
 0x276   : > { %v1097_v38 = vadd.f32 %v2550_v46, %v1096_v23  ;;  %v915_v23 = vmul.f32 %v2422_v36, %v3175_v17  ;;  %v2591_v37 = vpop.eup %1654  ;;  %v1123_v45 = vadd.f32 %v2587_v31, %v2584_v6  ;;  %1678 = vpow2.f32 %v1054_v30 }
 0x277   : > { %v2597_v40 = vpop.eup %1656  ;;  %1680 = vpow2.f32 %v992_v34 }
 0x278   : > { %v1098_v32 = vadd.f32 %v2558_v27, %v1097_v38  ;;  %v917_v38 = vmul.f32 %v2422_v36, %v2319_v18  ;;  %v2601_v25 = vpop.eup %1658  ;;  %v1124_v9 = vadd.f32 %v2597_v40, %v1123_v45  ;;  %v1000_v55 = vmul.f32 1.442695, %v915_v23  ;;  %v3178_v23 = vld [vmem:[#allocation20_spill] sm:$0xff] }
 0x279   : > { %v2606_v0 = vpop.eup %1660  ;;  %1682 = vpow2.f32 %v1058_v21  ;;  %v1066_v18 = vmul.f32 1.442695, %v2434_v49  ;;  %v925_v34 = vmul.f32 %v2422_v36, %v3178_v23  ;;  %v1012_v21 = vmul.f32 1.442695, %v921_v61  ;;  %v3185_v23 = vld [vmem:[#allocation24_spill] sm:$0xff] }
 0x27a   : > { %v1099_v48 = vadd.f32 %v2566_v11, %v1098_v32  ;;  %v919_v32 = vmul.f32 %v2422_v36, %v3176_v4  ;;  %v2610_v19 = vpop.eup %1662  ;;  %v1125_v47 = vadd.f32 %v2606_v0, %v1124_v9  ;;  %1684 = vpow2.f32 %v996_v41 }
 0x27b   : > { %v2615_v44 = vpop.eup %1664  ;;  %1686 = vpow2.f32 %v1062_v54  ;;  %v1078_v45 = vmul.f32 1.442695, %v2444_v5  ;;  %v3179_v54 = vld [vmem:[#allocation19_spill] sm:$0xff]  ;;  %v1020_v61 = vmul.f32 1.442695, %v925_v34  ;;  %v933_v34 = vmul.f32 %v2422_v36, %v3185_v23 }
 0x27c   : > { %v1100_v62 = vadd.f32 %v2573_v39, %v1099_v48  ;;  %v1004_v48 = vmul.f32 1.442695, %v917_v38  ;;  %v2619_v13 = vpop.eup %1666  ;;  %v1126_v49 = vadd.f32 %v2615_v44, %v1125_v47  ;;  %1688 = vpow2.f32 %v1000_v55 }
 0x27d   : > { %v2624_v52 = vpop.eup %1668  ;;  %v1008_v56 = vmul.f32 1.442695, %v919_v32  ;;  %1690 = vpow2.f32 %v1066_v18  ;;  %v1082_v32 = vmul.f32 1.442695, %v2447_v12  ;;  %v3183_v12 = vld [vmem:[#allocation21_spill] sm:$0xff] }
 0x27e   : > { %v1101_v15 = vadd.f32 %v2577_v57, %v1100_v62  ;;  %v3177_v62 = vld [vmem:[#allocation18_spill] sm:$0xff]  ;;  %v2628_v30 = vpop.eup %1670  ;;  %v1127_v59 = vadd.f32 %v2624_v52, %v1126_v49  ;;  %1692 = vpow2.f32 %v1004_v48 }
 0x27f   : > { %v923_v16 = vmul.f32 %v2422_v36, %v3177_v62  ;;  %v2633_v17 = vpop.eup %1672  ;;  %1694 = vpow2.f32 %v1070_v53  ;;  %v931_v62 = vmul.f32 %v2422_v36, %v3183_v12 }
 0x280   : > { %v1102_v7 = vadd.f32 %v2580_v8, %v1101_v15  ;;  %v1128_v60 = vadd.f32 %v2633_v17, %v1127_v59  ;;  %1696 = vpow2.f32 %v1008_v56 }
 0x281   : > { %v1016_v9 = vmul.f32 1.442695, %v923_v16  ;;  %1698 = vpow2.f32 %v1074_v14 }
 0x282   : > { %v1103_v63 = vadd.f32 %v2591_v37, %v1102_v7  ;;  %v2637_v7 = vpop.eup %1674  ;;  %1700 = vpow2.f32 %v1012_v21 }
 0x283   : > { %v2642_v41 = vpop.eup %1676  ;;  %1702 = vpow2.f32 %v1078_v45 }
 0x284   : > { %v1104_v50 = vadd.f32 %v2601_v25, %v1103_v63  ;;  %v927_v63 = vmul.f32 %v2422_v36, %v3179_v54  ;;  %v2646_v4 = vpop.eup %1678  ;;  %v1129_v5 = vadd.f32 %v2642_v41, %v1128_v60  ;;  %1704 = vpow2.f32 %v1016_v9 }
 0x285   : > { %v2651_v18 = vpop.eup %1680  ;;  %1706 = vpow2.f32 %v1082_v32  ;;  %v1032_v32 = vmul.f32 1.442695, %v931_v62 }
 0x286   : > { %v1105_v58 = vadd.f32 %v2610_v19, %v1104_v50  ;;  %3180 = vst [vmem:[#allocation11_spill] sm:$0xff] %v2651_v18  ;;  %v3181_v50 = vld [vmem:[#allocation22_spill] sm:$0xff]  ;;  %v2655_v48 = vpop.eup %1682  ;;  %v1024_v16 = vmul.f32 1.442695, %v927_v63  ;;  %1708 = vpow2.f32 %v1020_v61  ;;  %v3187_v63 = vld [vmem:[#allocation23_spill] sm:$0xff] }
 0x287   : > { %v929_v47 = vmul.f32 %v2422_v36, %v3181_v50  ;;  %v2659_v49 = vpop.eup %1684  ;;  %v935_v9 = vmul.f32 %v2422_v36, %v3187_v63  ;;  %v3189_v61 = vld [vmem:[#allocation26_spill] sm:$0xff] }
 0x288   : > { %v1106_v15 = vadd.f32 %v2619_v13, %v1105_v58  ;;  %v1130_v58 = vadd.f32 %v2651_v18, %v1129_v5  ;;  %3182 = vst [vmem:[#allocation12_spill] sm:$0xff] %v2659_v49  ;;  %v2663_v56 = vpop.eup %1686  ;;  %1710 = vpow2.f32 %v1024_v16 }
 0x289   : > { %v2667_v59 = vpop.eup %1688  ;;  %v1028_v21 = vmul.f32 1.442695, %v929_v47 }
 0x28a   : > { %v1107_v38 = vadd.f32 %v2628_v30, %v1106_v15  ;;  %v1131_v15 = vadd.f32 %v2659_v49, %v1130_v58  ;;  %3184 = vst [vmem:[#allocation14_spill] sm:$0xff] %v2667_v59  ;;  %v2671_v45 = vpop.eup %1690  ;;  %v1036_v58 = vmul.f32 1.442695, %v933_v34 }
 0x28b   : > { %v2675_v54 = vpop.eup %1692  ;;  %1712 = vpow2.f32 %v1028_v21 }
 0x28c   : > { %v1108_v55 = vadd.f32 %v2637_v7, %v1107_v38  ;;  %v1132_v60 = vadd.f32 %v2667_v59, %v1131_v15  ;;  %3186 = vst [vmem:[#allocation13_spill] sm:$0xff] %v2675_v54  ;;  %v3191_v15 = vld [vmem:[#allocation25_spill] sm:$0xff]  ;;  %1714 = vpow2.f32 %v1032_v32 }
 0x28d   : > { %v939_v23 = vmul.f32 %v2422_v36, %v3191_v15  ;;  %1716 = vpow2.f32 %v1036_v58 }
 0x28e   : > { %v1109_v53 = vadd.f32 %v2646_v4, %v1108_v55  ;;  %v2679_v55 = vpop.eup %1694  ;;  %v1133_v50 = vadd.f32 %v2675_v54, %v1132_v60 }
 0x28f   : > { %v2683_v47 = vpop.eup %1696 }
 0x290   : > { %v1110_v14 = vadd.f32 %v2655_v48, %v1109_v53  ;;  %3188 = vst [vmem:[#allocation15_spill] sm:$0xff] %v2683_v47  ;;  %v937_v53 = vmul.f32 %v2422_v36, %v3189_v61  ;;  %v2687_v12 = vpop.eup %1698  ;;  %v1134_v16 = vadd.f32 %v2683_v47, %v1133_v50  ;;  %v3193_v61 = vld [vmem:[#allocation28_spill] sm:$0xff] }
 0x291   : > { %v2691_v62 = vpop.eup %1700 }
 0x292   : > { %v1111_v38 = vadd.f32 %v2663_v56, %v1110_v14  ;;  %3190 = vst [vmem:[#allocation16_spill] sm:$0xff] %v2691_v62  ;;  %v2695_v60 = vpop.eup %1702  ;;  %v1135_v21 = vadd.f32 %v2691_v62, %v1134_v16  ;;  %v1044_v50 = vmul.f32 1.442695, %v937_v53 }
 0x293   : > { %v2699_v34 = vpop.eup %1704 }
 0x294   : > { %v1112_v5 = vadd.f32 %v2671_v45, %v1111_v38  ;;  %v1040_v38 = vmul.f32 1.442695, %v935_v9  ;;  %3192 = vst [vmem:[#allocation17_spill] sm:$0xff] %v2699_v34  ;;  %v1707_v47 = vpop.eup %1706  ;;  %v1136_v15 = vadd.f32 %v2699_v34, %v1135_v21  ;;  %v3195_v9 = vld [vmem:[#allocation27_spill] sm:$0xff] }
 0x295   : > { %v2705_v32 = vpop.eup %1708  ;;  %v943_v59 = vmul.f32 %v2422_v36, %v3195_v9 }
 0x296   : > { %v1113_v14 = vadd.f32 %v2679_v55, %v1112_v5  ;;  %v941_v5 = vmul.f32 %v2422_v36, %v3193_v61  ;;  %3194 = vst [vmem:[#allocation18_spill] sm:$0xff] %v2705_v32  ;;  %1718 = vpow2.f32 %v1040_v38  ;;  %v1137_v62 = vadd.f32 %v2705_v32, %v1136_v15  ;;  %v2710_v49 = vpop.eup %1710  ;;  %v3196_v61 = vld [vmem:[#allocation30_spill] sm:$0xff]  ;;  %v3199_v38 = vld [vmem:[#allocation29_spill] sm:$0xff] }
 0x297   : > { %v945_v53 = vmul.f32 %v2422_v36, %v3196_v61  ;;  %1720 = vpow2.f32 %v1044_v50  ;;  %v2715_v34 = vpop.eup %1712  ;;  %v1056_v18 = vmul.f32 1.442695, %v943_v59  ;;  %v947_v15 = vmul.f32 %v2422_v36, %v3199_v38 }
 0x298   : > { %v1114_v63 = vadd.f32 %v2687_v12, %v1113_v14  ;;  %v1048_v14 = vmul.f32 1.442695, %v939_v23  ;;  %v1052_v58 = vmul.f32 1.442695, %v941_v5  ;;  %v1138_v21 = vadd.f32 %v2710_v49, %v1137_v62  ;;  %3197 = vst [vmem:[#allocation20_spill] sm:$0xff] %v2715_v34 }
 0x299   : > { %v1060_v32 = vmul.f32 1.442695, %v945_v53 }
 0x29a   : > { %v1115_v54 = vadd.f32 %v2695_v60, %v1114_v63  ;;  %1722 = vpow2.f32 %v1048_v14  ;;  %v1139_v23 = vadd.f32 %v2715_v34, %v1138_v21  ;;  %v1064_v21 = vmul.f32 1.442695, %v947_v15 }
 0x29b   : > { %1724 = vpow2.f32 %v1052_v58  ;;  %v953_v15 = vmul.f32 %v2422_v36, %v2400_v10  ;;  %v1084_v10 = vmul.f32 1.442695, %v2512_v24 }
 0x29c   : > { %v1116_v16 = vadd.f32 %v1707_v47, %v1115_v54  ;;  %v2718_v54 = vpop.eup %1714  ;;  %1726 = vpow2.f32 %v1056_v18 }
 0x29d   : > { %3198 = vst [vmem:[#allocation19_spill] sm:$0xff] %v2718_v54  ;;  %v1140_v5 = vadd.f32 %v2718_v54, %v1139_v23  ;;  %v2723_v50 = vpop.eup %1716  ;;  %1728 = vpow2.f32 %v1060_v32 }
 0x29e   : > { %v1117_v63 = vrot.slane %v1116_v16, 4  ;;  %1730 = vpow2.f32 %v1064_v21  ;;  %v1076_v21 = vmul.f32 1.442695, %v953_v15 }
 0x29f   : > { %v1141_v14 = vadd.f32 %v2723_v50, %v1140_v5 }
 0x2a0   : > { %v1118_v9 = vadd.f32 %v1117_v63, %v1116_v16  ;;  %v2726_v59 = vpop.eup %1718  ;;  %v3200_v16 = vld [vmem:[#allocation32_spill] sm:$0xff] }
 0x2a1   : > { %v949_v63 = vmul.f32 %v2422_v36, %v3200_v16  ;;  %v1142_v58 = vadd.f32 %v2726_v59, %v1141_v14  ;;  %v2731_v53 = vpop.eup %1720 }
 0x2a2   : > { %v1119_v61 = vrot.slane %v1118_v9, 2 }
 0x2a3   : > { %v1143_v23 = vadd.f32 %v2731_v53, %v1142_v58  ;;  %v1068_v18 = vmul.f32 1.442695, %v949_v63 }
 0x2a4   : > { %v1120_v62 = vadd.f32 %v1119_v61, %v1118_v9  ;;  %v2734_v54 = vpop.eup %1722  ;;  %v3201_v9 = vld [vmem:[#allocation31_spill] sm:$0xff] }
 0x2a5   : > { %v951_v61 = vmul.f32 %v2422_v36, %v3201_v9  ;;  %v1144_v5 = vadd.f32 %v2734_v54, %v1143_v23  ;;  %v2739_v32 = vpop.eup %1724 }
 0x2a6   : > { %v1121_v34 = vrot.slane %v1120_v62, 1 }
 0x2a7   : > { %v1145_v14 = vadd.f32 %v2739_v32, %v1144_v5 }
 0x2a8   : > { %v1122_v38 = vadd.f32 %v1121_v34, %v1120_v62  ;;  %v2744_v34 = vpop.eup %1726  ;;  %v1072_v62 = vmul.f32 1.442695, %v951_v61 }
 0x2a9   : > { %v1146_v16 = vadd.f32 %v2744_v34, %v1145_v14  ;;  %v2747_v63 = vpop.eup %1728 }
 0x2aa   : > { %1732 = vrcp.f32 %v1122_v38  ;;  %v1080_v38 = vmul.f32 1.442695, %v2508_v28  ;;  %v2751_v23 = vpop.eup %1730 }
 0x2ab   : > { %1734 = vpow2.f32 %v1068_v18  ;;  %v1147_v58 = vadd.f32 %v2747_v63, %v1146_v16 }
 0x2ac   : > { %1736 = vpow2.f32 %v1072_v62 }
 0x2ad   : > { %1738 = vpow2.f32 %v1076_v21  ;;  %v1148_v36 = vadd.f32 %v2751_v23, %v1147_v58 }
 0x2ae   : > { %1740 = vpow2.f32 %v1080_v38 }
 0x2af   : > { %1742 = vpow2.f32 %v1084_v10 }
 0x2b4   : > { %v1733_v9 = vpop.eup %1732 }
 0x2b5   : > { %v2755_v18 = vmul.f32 %v1733_v9, %v1707_v47  ;;  %v2757_v61 = vpop.eup %1734  ;;  %v2760_v5 = vmul.f32 %v1733_v9, %v2558_v27  ;;  %v2763_v15 = vmul.f32 %v1733_v9, %v2566_v11  ;;  %v2767_v14 = vmul.f32 %v1733_v9, %v2573_v39 }
 0x2b6   : > { %v1149_v28 = vadd.f32 %v2757_v61, %v1148_v36  ;;  %v2770_v24 = vmul.f32 %v1733_v9, %v2577_v57  ;;  %v2773_v47 = vmul.f32 %v1733_v9, %v2580_v8  ;;  %v2776_v62 = vmul.f32 %v1733_v9, %v2591_v37 }
 0x2b7   : > { %v2779_v27 = vmul.f32 %v1733_v9, %v2601_v25  ;;  %v2782_v11 = vmul.f32 %v1733_v9, %v2610_v19  ;;  %v2785_v16 = vmul.f32 %v1733_v9, %v2619_v13  ;;  %v2788_v39 = vmul.f32 %v1733_v9, %v2628_v30  ;;  %v2802_v19 = vpop.eup %1736 }
 0x2b8   : > { %v2791_v57 = vmul.f32 %v1733_v9, %v2637_v7  ;;  %v2794_v8 = vmul.f32 %v1733_v9, %v2646_v4  ;;  %v2797_v37 = vmul.f32 %v1733_v9, %v2655_v48  ;;  %v2800_v25 = vmul.f32 %v1733_v9, %v2663_v56  ;;  %v1739_v21 = vpop.eup %1738 }
 0x2b9   : > { %v2805_v13 = vmul.f32 %v1733_v9, %v2671_v45  ;;  %v2808_v30 = vmul.f32 %v1733_v9, %v2679_v55  ;;  %v2811_v7 = vmul.f32 %v1733_v9, %v2687_v12  ;;  %v2814_v4 = vmul.f32 %v1733_v9, %v2695_v60  ;;  %v1741_v56 = vpop.eup %1740 }
 0x2ba   : > { %3202 = vst [vmem:[#allocation22_spill] sm:$0xff] %v2791_v57  ;;  %3203 = vst [vmem:[#allocation21_spill] sm:$0xff] %v2794_v8  ;;  %v1150_v48 = vadd.f32 %v2802_v19, %v1149_v28  ;;  %v1743_v10 = vpop.eup %1742  ;;  %v2818_v12 = vmul.f32 %v1733_v9, %v2479_v1  ;;  %v2821_v60 = vmul.f32 %v1733_v9, %v2481_v20 }
 0x2bb   : > { %3204 = vst [vmem:[#allocation24_spill] sm:$0xff] %v2797_v37  ;;  %3205 = vst [vmem:[#allocation23_spill] sm:$0xff] %v2800_v25  ;;  %v2824_v28 = vmul.f32 %v1733_v9, %v2487_v35  ;;  %v2839_v1 = vmul.f32 %v1733_v9, %v2522_v22  ;;  %v2842_v20 = vmul.f32 %v1733_v9, %v2527_v29 }
 0x2bc   : > { %3206 = vst [vmem:[#allocation26_spill] sm:$0xff] %v2805_v13  ;;  %3207 = vst [vmem:[#allocation25_spill] sm:$0xff] %v2808_v30  ;;  %v1151_v58 = vadd.f32 %v1739_v21, %v1150_v48  ;;  %v2827_v48 = vmul.f32 %v1733_v9, %v2492_v2  ;;  %v2848_v2 = vmul.f32 %v1733_v9, %v2538_v51 }
 0x2bd   : > { %3208 = vst [vmem:[#allocation28_spill] sm:$0xff] %v2811_v7  ;;  %3209 = vst [vmem:[#allocation27_spill] sm:$0xff] %v2814_v4 }
 0x2be   : > { %v1152_v38 = vadd.f32 %v1741_v56, %v1151_v58  ;;  %v3210_v58 = vld [vmem:[#allocation11_spill] sm:$0xff] }
 0x2c0   : > { %v1153_v36 = vadd.f32 %v1743_v10, %v1152_v38  ;;  %v3211_v38 = vld [vmem:[#allocation12_spill] sm:$0xff] }
 0x2c2   : > { %v1154_v25 = vrot.slane %v1153_v36, 4 }
 0x2c4   : > { %v1155_v45 = vadd.f32 %v1154_v25, %v1153_v36  ;;  %v2830_v25 = vmul.f32 %v1733_v9, %v2497_v3  ;;  %v2851_v3 = vmul.f32 %v1733_v9, %v2544_v42  ;;  %v3213_v36 = vld [vmem:[#allocation13_spill] sm:$0xff] }
 0x2c6   : > { %v1156_v13 = vrot.slane %v1155_v45, 2 }
 0x2c8   : > { %v1157_v37 = vadd.f32 %v1156_v13, %v1155_v45  ;;  %v2833_v13 = vmul.f32 %v1733_v9, %v2504_v33  ;;  %v2854_v33 = vmul.f32 %v1733_v9, %v2550_v46  ;;  %v3214_v45 = vld [vmem:[#allocation15_spill] sm:$0xff] }
 0x2ca   : > { %v1158_v55 = vrot.slane %v1157_v37, 1 }
 0x2cc   : > { %v1159_v30 = vadd.f32 %v1158_v55, %v1157_v37  ;;  %v2836_v37 = vmul.f32 %v1733_v9, %v2515_v26  ;;  %v3215_v55 = vld [vmem:[#allocation16_spill] sm:$0xff] }
 0x2ce   : > { %1744 = vrcp.f32 %v1159_v30  ;;  %v2845_v30 = vmul.f32 %v1733_v9, %v2532_v43 }
 0x2d8   : > { %v1745_v35 = vpop.eup %1744 }
 0x2d9   : > { %v1225_v26 = vmul.f32 %v1745_v35, %v1743_v10  ;;  %v2858_v22 = vmul.f32 %v1745_v35, %v2584_v6  ;;  %v2861_v29 = vmul.f32 %v1745_v35, %v2587_v31  ;;  %v2864_v43 = vmul.f32 %v1745_v35, %v2597_v40  ;;  %v3212_v10 = vld [vmem:[#allocation14_spill] sm:$0xff] }
 0x2da   : > { %v2867_v51 = vmul.f32 %v1745_v35, %v2606_v0  ;;  %v2870_v42 = vmul.f32 %v1745_v35, %v2615_v44  ;;  %v2873_v46 = vmul.f32 %v1745_v35, %v2624_v52  ;;  %v2876_v9 = vmul.f32 %v1745_v35, %v2633_v17 }
 0x2db   : > { %v1257_v6 = vmax.f32 %v2755_v18, %v1225_v26  ;;  %v2880_v31 = vmul.f32 %v1745_v35, %v2642_v41  ;;  %v2883_v40 = vmul.f32 %v1745_v35, %v3210_v58  ;;  %v2886_v0 = vmul.f32 %v1745_v35, %v3211_v38  ;;  %v3216_v26 = vld [vmem:[#allocation17_spill] sm:$0xff]  ;;  %v3217_v58 = vld [vmem:[#allocation18_spill] sm:$0xff] }
 0x2dc   : > { %v2889_v44 = vmul.f32 %v1745_v35, %v3212_v10  ;;  %v2892_v52 = vmul.f32 %v1745_v35, %v3213_v36  ;;  %v2895_v17 = vmul.f32 %v1745_v35, %v3214_v45  ;;  %v2898_v18 = vmul.f32 %v1745_v35, %v3215_v55  ;;  %v3218_v10 = vld [vmem:[#allocation20_spill] sm:$0xff]  ;;  %v3219_v36 = vld [vmem:[#allocation19_spill] sm:$0xff] }
 0x2dd   : > { %v1321_v41 = vmax.f32 %v1257_v6, 0.0  ;;  %v2901_v4 = vmul.f32 %v1745_v35, %v3216_v26  ;;  %v2904_v7 = vmul.f32 %v1745_v35, %v3217_v58  ;;  %v2907_v38 = vmul.f32 %v1745_v35, %v2710_v49 }
 0x2de   : > { %v2910_v8 = vmul.f32 %v1745_v35, %v3218_v10  ;;  %v2913_v57 = vmul.f32 %v1745_v35, %v3219_v36  ;;  %v2916_v45 = vmul.f32 %v1745_v35, %v2723_v50  ;;  %v2919_v6 = vmul.f32 %v1745_v35, %v2726_v59 }
 0x2df   : > { %1353 = vst [vmem:[%s2921_s7 + $0xf8] sm:$0xff] %v1321_v41  ;;  %v2925_v55 = vmul.f32 %v1745_v35, %v2731_v53  ;;  %v2928_v49 = vmul.f32 %v1745_v35, %v2734_v54  ;;  %v2931_v26 = vmul.f32 %v1745_v35, %v2739_v32  ;;  %v2934_v58 = vmul.f32 %v1745_v35, %v2744_v34 }
 0x2e0   : > { %v2937_v50 = vmul.f32 %v1745_v35, %v2747_v63  ;;  %v2940_v59 = vmul.f32 %v1745_v35, %v2751_v23  ;;  %v2943_v41 = vmul.f32 %v1745_v35, %v2757_v61  ;;  %v2946_v53 = vmul.f32 %v1745_v35, %v2802_v19 }
 0x2e1   : > { %v2948_v54 = vmul.f32 %v1745_v35, %v1739_v21  ;;  %v2950_v10 = vmul.f32 %v1745_v35, %v1741_v56  ;;  %v1226_v32 = vmax.f32 %v2818_v12, %v2858_v22  ;;  %v1227_v34 = vmax.f32 %v2821_v60, %v2861_v29  ;;  %v3227_v29 = vld [vmem:[#allocation27_spill] sm:$0xff] }
 0x2e2   : > { %v1228_v63 = vmax.f32 %v2824_v28, %v2864_v43  ;;  %v1229_v23 = vmax.f32 %v2827_v48, %v2867_v51  ;;  %v1230_v61 = vmax.f32 %v2830_v25, %v2870_v42  ;;  %v1231_v19 = vmax.f32 %v2833_v13, %v2873_v46 }
 0x2e3   : > { %v1232_v21 = vmax.f32 %v2836_v37, %v2876_v9  ;;  %v1233_v56 = vmax.f32 %v2839_v1, %v2880_v31  ;;  %v1234_v12 = vmax.f32 %v2842_v20, %v2883_v40  ;;  %v1235_v60 = vmax.f32 %v2845_v30, %v2886_v0 }
 0x2e4   : > { %v1236_v28 = vmax.f32 %v2848_v2, %v2889_v44  ;;  %v1237_v48 = vmax.f32 %v2851_v3, %v2892_v52  ;;  %v1238_v25 = vmax.f32 %v2854_v33, %v2895_v17  ;;  %v1239_v13 = vmax.f32 %v2760_v5, %v2898_v18  ;;  %v3226_v33 = vld [vmem:[#allocation28_spill] sm:$0xff] }
 0x2e5   : > { %v1240_v37 = vmax.f32 %v2763_v15, %v2901_v4  ;;  %v1241_v1 = vmax.f32 %v2767_v14, %v2904_v7  ;;  %v1242_v20 = vmax.f32 %v2770_v24, %v2907_v38  ;;  %v1243_v35 = vmax.f32 %v2773_v47, %v2910_v8  ;;  %v3220_v24 = vld [vmem:[#allocation22_spill] sm:$0xff]  ;;  %v3221_v47 = vld [vmem:[#allocation21_spill] sm:$0xff] }
 0x2e6   : > { %v1244_v30 = vmax.f32 %v2776_v62, %v2913_v57  ;;  %v1245_v2 = vmax.f32 %v2779_v27, %v2916_v45  ;;  %v1246_v5 = vmax.f32 %v2782_v11, %v2919_v6  ;;  %v1247_v15 = vmax.f32 %v2785_v16, %v2925_v55  ;;  %v3222_v62 = vld [vmem:[#allocation24_spill] sm:$0xff]  ;;  %v3223_v27 = vld [vmem:[#allocation23_spill] sm:$0xff]  ;;  %v3224_v11 = vld [vmem:[#allocation26_spill] sm:$0xff] }
 0x2e7   : > { %v1248_v14 = vmax.f32 %v2788_v39, %v2928_v49  ;;  %v1249_v7 = vmax.f32 %v3220_v24, %v2931_v26  ;;  %v1250_v8 = vmax.f32 %v3221_v47, %v2934_v58  ;;  %v1251_v57 = vmax.f32 %v3222_v62, %v2937_v50  ;;  %v3225_v16 = vld [vmem:[#allocation25_spill] sm:$0xff] }
 0x2e8   : > { %v1252_v4 = vmax.f32 %v3223_v27, %v2940_v59  ;;  %v1253_v3 = vmax.f32 %v3224_v11, %v2943_v41  ;;  %v1254_v39 = vmax.f32 %v3225_v16, %v2946_v53  ;;  %v1255_v22 = vmax.f32 %v3226_v33, %v2948_v54 }
 0x2e9   : > { %v1256_v43 = vmax.f32 %v3227_v29, %v2950_v10  ;;  %v1290_v51 = vmax.f32 %v1226_v32, 0.0  ;;  %v1291_v42 = vmax.f32 %v1227_v34, 0.0  ;;  %v1292_v46 = vmax.f32 %v1228_v63, 0.0 }
 0x2ea   : > { %v1293_v9 = vmax.f32 %v1229_v23, 0.0  ;;  %v1294_v31 = vmax.f32 %v1230_v61, 0.0  ;;  %v1295_v40 = vmax.f32 %v1231_v19, 0.0  ;;  %v1296_v0 = vmax.f32 %v1232_v21, 0.0 }
 0x2eb   : > { %v1297_v44 = vmax.f32 %v1233_v56, 0.0  ;;  %v1298_v52 = vmax.f32 %v1234_v12, 0.0  ;;  %v1299_v17 = vmax.f32 %v1235_v60, 0.0  ;;  %v1300_v18 = vmax.f32 %v1236_v28, 0.0  ;;  %1322 = vst [vmem:[%s2921_s7] sm:$0xff] %v1290_v51  ;;  %1323 = vst [vmem:[%s2921_s7 + $0x8] sm:$0xff] %v1291_v42 }
 0x2ec   : > { %1324 = vst [vmem:[%s2921_s7 + $0x10] sm:$0xff] %v1292_v46  ;;  %v1301_v38 = vmax.f32 %v1237_v48, 0.0  ;;  %v1302_v36 = vmax.f32 %v1238_v25, 0.0  ;;  %v1303_v45 = vmax.f32 %v1239_v13, 0.0  ;;  %v1304_v6 = vmax.f32 %v1240_v37, 0.0  ;;  %1325 = vst [vmem:[%s2921_s7 + $0x18] sm:$0xff] %v1293_v9 }
 0x2ed   : > { %1326 = vst [vmem:[%s2921_s7 + $0x20] sm:$0xff] %v1294_v31  ;;  %1327 = vst [vmem:[%s2921_s7 + $0x28] sm:$0xff] %v1295_v40  ;;  %v1305_v55 = vmax.f32 %v1241_v1, 0.0  ;;  %v1306_v49 = vmax.f32 %v1242_v20, 0.0  ;;  %v1307_v26 = vmax.f32 %v1243_v35, 0.0  ;;  %v1308_v58 = vmax.f32 %v1244_v30, 0.0 }
 0x2ee   : > { %1328 = vst [vmem:[%s2921_s7 + $0x30] sm:$0xff] %v1296_v0  ;;  %1329 = vst [vmem:[%s2921_s7 + $0x38] sm:$0xff] %v1297_v44  ;;  %v1309_v50 = vmax.f32 %v1245_v2, 0.0  ;;  %v1310_v59 = vmax.f32 %v1246_v5, 0.0  ;;  %v1311_v41 = vmax.f32 %v1247_v15, 0.0  ;;  %v1312_v53 = vmax.f32 %v1248_v14, 0.0 }
 0x2ef   : > { %1330 = vst [vmem:[%s2921_s7 + $0x40] sm:$0xff] %v1298_v52  ;;  %1331 = vst [vmem:[%s2921_s7 + $0x48] sm:$0xff] %v1299_v17  ;;  %v1313_v54 = vmax.f32 %v1249_v7, 0.0  ;;  %v1314_v10 = vmax.f32 %v1250_v8, 0.0  ;;  %v1315_v32 = vmax.f32 %v1251_v57, 0.0  ;;  %v1316_v34 = vmax.f32 %v1252_v4, 0.0 }
 0x2f0   : > { %1332 = vst [vmem:[%s2921_s7 + $0x50] sm:$0xff] %v1300_v18  ;;  %1333 = vst [vmem:[%s2921_s7 + $0x58] sm:$0xff] %v1301_v38  ;;  %v1317_v63 = vmax.f32 %v1253_v3, 0.0  ;;  %v1318_v23 = vmax.f32 %v1254_v39, 0.0  ;;  %v1319_v61 = vmax.f32 %v1255_v22, 0.0  ;;  %v1320_v19 = vmax.f32 %v1256_v43, 0.0 }
 0x2f1   : > { %1334 = vst [vmem:[%s2921_s7 + $0x60] sm:$0xff] %v1302_v36  ;;  %1335 = vst [vmem:[%s2921_s7 + $0x68] sm:$0xff] %v1303_v45 }
 0x2f2   : > { %1336 = vst [vmem:[%s2921_s7 + $0x70] sm:$0xff] %v1304_v6  ;;  %1337 = vst [vmem:[%s2921_s7 + $0x78] sm:$0xff] %v1305_v55 }
 0x2f3   : > { %1338 = vst [vmem:[%s2921_s7 + $0x80] sm:$0xff] %v1306_v49  ;;  %1339 = vst [vmem:[%s2921_s7 + $0x88] sm:$0xff] %v1307_v26 }
 0x2f4   : > { %1340 = vst [vmem:[%s2921_s7 + $0x90] sm:$0xff] %v1308_v58  ;;  %1341 = vst [vmem:[%s2921_s7 + $0x98] sm:$0xff] %v1309_v50 }
 0x2f5   : > { %1342 = vst [vmem:[%s2921_s7 + $0xa0] sm:$0xff] %v1310_v59  ;;  %1343 = vst [vmem:[%s2921_s7 + $0xa8] sm:$0xff] %v1311_v41 }
 0x2f6   : > { %1344 = vst [vmem:[%s2921_s7 + $0xb0] sm:$0xff] %v1312_v53  ;;  %1345 = vst [vmem:[%s2921_s7 + $0xb8] sm:$0xff] %v1313_v54 }
 0x2f7   : > { %1346 = vst [vmem:[%s2921_s7 + $0xc0] sm:$0xff] %v1314_v10  ;;  %1347 = vst [vmem:[%s2921_s7 + $0xc8] sm:$0xff] %v1315_v32 }
 0x2f8   : > { %1348 = vst [vmem:[%s2921_s7 + $0xd0] sm:$0xff] %v1316_v34  ;;  %1349 = vst [vmem:[%s2921_s7 + $0xd8] sm:$0xff] %v1317_v63 }
 0x2f9   : > { %1350 = vst [vmem:[%s2921_s7 + $0xe0] sm:$0xff] %v1318_v23  ;;  %1351 = vst [vmem:[%s2921_s7 + $0xe8] sm:$0xff] %v1319_v61 }
 0x2fa   : > { %1352 = vst [vmem:[%s2921_s7 + $0xf0] sm:$0xff] %v1320_v19 }
 0x2fb   : > { %1819 = shalt.err (!%p1816_p2)
}
 0x2fc   : > { %s1820_s8 = scalar_lea.hbm %s3038_s27, 4096  ;;  %s1824_s6 = scalar_lea.hbm %s3103_s2, 8192 }
 0x2fd   : > { %p1821_p9 = scmp.ne.s32.totalorder %s3038_s27, %s1820_s8  ;;  %p1825_p6 = scmp.lt.u32.totalorder %s3038_s27, %s3103_s2 }
 0x2fe   : > { %p1826_p13 = scmp.lt.u32.totalorder %s1824_s6, %s1820_s8  ;;  %p1828_p8 = scmp.lt.u32.totalorder %s1820_s8, %s3038_s27 }
 0x2ff   : > { %p1822_p11 = pnand %p1821_p9, %p3228_p0 }
 0x300   : > { %p1827_p5 = por %p1826_p13, %p1825_p6 }
 0x301   : > { %p1823_p3 = pneg %p1822_p11 }
 0x302   : > { %p1829_p7 = por %p1828_p8, %p1827_p5 }
 0x304   : > { %p1830_p4 = pnand %p1829_p7, %p1823_p3 }
 0x306   : > { %1833 = shalt.err (!%p1830_p4)
}
 0x307   : > { %s1898_s21 = smov 128   ;;  %s1899_s7 = smov 8  }
 0x308   : > { %1544 = dma.vmem_to_hbm [thread:$0]  (%p3228_p0), %s3040_s30, 4096, %s3038_s27, %s1355_s28, %s1898_s21, %s1898_s21, %s1899_s7  }
 0x309 PF: > { %s1385_s19 = sand.u32 1, %s1872_s9   ;;  %p3229_p10 = scmp.ne.s32.totalorder %s3141_s24, 0 }
 0x30a   : > { %p3230_p12 = scmp.ge.s32.totalorder %s1892_s14, 2  ;;  %s1386_s12 = scalar_lea.sflag [#allocation4], %s1385_s19 }
 0x30c   : > { %p1554_p1 = pnand %p3230_p12, %p3229_p10 }
 0x30e   : > { %1867 = dma.done.wait (!%p1554_p1), %s1386_s12, 4096  }
 0x30f   : > { %1869 = vsyncadd (!%p1554_p1), %s1386_s12, 4294963200  ;;  %s21_s14 = sadd.s32 1, %s1892_s14   ;;  %s3231_s9 = smov %s1876_s10 }
 0x310   : > { %p18_p2 = scmp.ge.s32.totalorder %s21_s14, 4   ;;  %s3232_s10 = smov %s1880_s11 }
 0x311   : > { %s3233_s11 = smov %s1971_s23  ;;  %s3234_s12 = smov %s1888_s13 }
 0x312   : > { %s3235_s13 = smov %s3237_s17  ;;  %20 = sbr.rel (!%p18_p2) target bundleno = 8 (0x8), region = 90 }
 0x319   :  { %1391 = vsyncpa [#allocation3], 1 }
 0x31a   :  { %1393 = vsyncpa [#allocation3 + $0x1], 1 }
 0x31b   :  { %1394 = vsyncpa [#allocation6], 1 }
 0x31c   :  { %1396 = vsyncpa [#allocation6 + $0x1], 1 }
 0x31d   :  { %1397 = vsyncpa [#allocation4], 1 }
 0x31e   :  { %1399 = vsyncpa [#allocation4 + $0x1], 1 }

</bundles_post_ra>
